<compile_context>
chip_gen: v7x
topology: tpu7x:2x2x1
jax: 0.10.0
libtpu: 0.0.40
codegen_flags: <defaults>
</compile_context>

<pallas_src>
import functools

import jax
import jax.numpy as jnp
import numpy as np
from jax import lax
from jax.experimental import pallas as pl
from jax.experimental.pallas import tpu as pltpu

PART = 7                 # fixed "part" in the PyTorch module
NTOK = PART * PART       # 49 partitions
EPS = 1e-6               # LayerNorm eps


def _ln(z, w, b):
    """PyTorch-style LayerNorm over the last axis (biased variance)."""
    mu = jnp.mean(z, axis=-1, keepdims=True)
    var = jnp.mean((z - mu) ** 2, axis=-1, keepdims=True)
    return (z - mu) * lax.rsqrt(var + EPS) * w + b


# ---------------------------------------------------------------------------
# Kernel 1: avg-pool box, token-major output (B, NTOK, C)
# ---------------------------------------------------------------------------
def _pool_kernel(x_ref, win_ref, box_ref, *, inv_t2):
    xb = x_ref[0].astype(jnp.float32)                           # (cb, HW)
    # box[n, c] = mean_{pixel l in window n} x[c, l]  ==  win @ x^T  (A @ B^T)
    box_ref[0] = lax.dot_general(
        win_ref[...], xb, (((1,), (1,)), ((), ())),
        preferred_element_type=jnp.float32) * inv_t2            # (NTOK, cb)


# ---------------------------------------------------------------------------
# Kernel 2: LN q/k/v -> grouped attention -> full-K rect GEMM -> LN
# ---------------------------------------------------------------------------
def _attend_kernel(box_ref, ln_ref, rwt_ref, o_ref, att_ref, *, g, d, scl):
    box = box_ref[0]                                            # (NTOK, C)
    ln = ln_ref[...]                                            # (8, C)
    q = _ln(box, ln[0], ln[1]) * scl                            # scale folded once
    k = _ln(box, ln[2], ln[3])
    v = _ln(box, ln[4], ln[5])
    for gi in range(g):                                         # static group loop
        sl = slice(gi * d, (gi + 1) * d)
        qg, kg, vg = q[:, sl], k[:, sl], v[:, sl]
        # q @ k^T without materializing kg.T (MXU consumes it natively)
        sim = lax.dot_general(qg, kg, (((1,), (1,)), ((), ())),
                              preferred_element_type=jnp.float32)
        sim = jax.nn.softmax(sim, axis=-1)
        sg = jnp.dot(sim, vg, preferred_element_type=jnp.float32)
        # deposit this group's output at its lane offset (no concat)
        att_ref[:, sl] = sg.astype(att_ref.dtype)
    # single full-K rect GEMM: (NTOK, C) bf16 x (C, C) bf16 -> f32 accumulate
    acc = jnp.dot(att_ref[...], rwt_ref[...],
                  preferred_element_type=jnp.float32)
    o_ref[0] = _ln(acc, ln[6], ln[7])                           # (NTOK, C)


# ---------------------------------------------------------------------------
# Kernel 3: out = x * sigmoid(shift + x), streamed over (batch, channel block)
# ---------------------------------------------------------------------------
def _gate_kernel(x_ref, shift_ref, win_ref, o_ref):
    xb = x_ref[0].astype(jnp.float32)                           # (cb, HW)
    sh = shift_ref[0]                                           # (NTOK, cb)
    # per-partition shift -> per-pixel shift: sh^T @ win on the MXU, no transpose
    sh_full = lax.dot_general(sh, win_ref[...], (((0,), (0,)), ((), ())),
                              preferred_element_type=jnp.float32)   # (cb, HW)
    o_ref[0] = (xb * jax.nn.sigmoid(sh_full + xb)).astype(o_ref.dtype)


# ---------------------------------------------------------------------------
# Helpers: generation-aware tiling / VMEM budgeting
# ---------------------------------------------------------------------------
def _round_up(v, m):
    return -(-v // m) * m


def _padded_bytes(shape, itemsize):
    """Approximate VMEM footprint of one buffer ((8,128)-tiled last two dims)."""
    if len(shape) == 1:
        return _round_up(int(shape[0]) * itemsize, 512)
    lead = 1
    for s in shape[:-2]:
        lead *= int(s)
    return (lead * _round_up(int(shape[-2]), 8)
            * _round_up(int(shape[-1]), 128) * itemsize)


def _vmem_capacity_bytes():
    try:
        return int(pltpu.get_tpu_info().vmem_capacity_bytes)
    except Exception:
        return 128 * 2 ** 20          # v5e/v6e default


def _target_tile_bytes():
    """Streaming-tile byte target, scaled with HBM bandwidth per generation."""
    try:
        kind = jax.devices()[0].device_kind.lower()
    except Exception:
        kind = ""
    if "v5" in kind:
        return 1 << 20                # ~0.82 TB/s HBM
    if "v6" in kind:
        return 2 << 20                # ~1.4 TB/s HBM
    return 4 << 20                    # v7x-class (~3.2 TB/s) and default


def _vmem_limit(buffers, capacity):
    """Actual double-buffered footprint + headroom, capped per generation."""
    need = sum(2 * _padded_bytes(s, isz) for s, isz in buffers)
    cap = (3 * capacity) // 4         # ~96 MiB v5e/v6e, ~48 MiB v7x
    return int(min(max(need + (8 << 20), 16 << 20), cap))


def _pick_channel_block(c, hw, itemsize, target_bytes):
    """Largest channel block cb that (a) divides C, (b) is a multiple of 128
    or equals C (legal on both the sublane axis of x tiles and the lane axis
    of the token-major box/shift tiles), and (c) keeps the x tile under the
    generation-aware byte target."""
    cands = [cb for cb in range(c, 0, -1)
             if c % cb == 0 and (cb == c or cb % 128 == 0)]
    for cb in cands:
        if cb * hw * itemsize <= target_bytes:
            return cb
    return cands[-1]


# ---------------------------------------------------------------------------
# Forward wrapper
# ---------------------------------------------------------------------------
def silutopsis_forward(x, params, *, channel_block=None):
    b, c, h, w = x.shape
    T = h // PART
    assert h == w == PART * T, "spatial extent must be a multiple of 7"
    g = max(c // 32, 1)
    d = c // g
    assert g * d == c, "channel count must split into 32-wide groups"
    scl = float(d) ** -0.5
    inv_t2 = 1.0 / float(T * T)
    HW = h * w

    # (B, C, H, W) -> (B, C, H*W): metadata-only reshape, no HBM traffic.
    x3 = x.reshape(b, c, HW)

    # Constant window-membership matrix: win[n, l] = 1 iff flat pixel l lies in
    # the n-th 7x7 partition (row-major over (ph, pw), matching flatten(2)).
    l = np.arange(HW)
    n_of_l = ((l // w) // T) * PART + ((l % w) // T)
    win = jnp.asarray((np.arange(NTOK)[:, None] == n_of_l[None, :])
                      .astype(np.float32))                      # (NTOK, HW)

    # Pack the 8 LayerNorm vectors into a single (8, C) operand (one DMA).
    ln_pack = jnp.stack(
        [params["q_w"], params["q_b"], params["k_w"], params["k_b"],
         params["v_w"], params["v_b"], params["rect_ln_w"], params["rect_ln_b"]],
        axis=0).astype(jnp.float32)
    # rect weight^T streamed in bf16 (halves DMA/VMEM; GEMM accumulates in f32).
    rwt = params["rect_w"].T.astype(jnp.bfloat16)               # (C_in, C_out)

    itemsize = x.dtype.itemsize
    vmem_cap = _vmem_capacity_bytes()
    cb = channel_block or _pick_channel_block(c, HW, itemsize, _target_tile_bytes())
    nc = c // cb

    # ---- kernel 1: pooled box (B, NTOK, C), token-major ----------------------
    box = pl.pallas_call(
        functools.partial(_pool_kernel, inv_t2=inv_t2),
        out_shape=jax.ShapeDtypeStruct((b, NTOK, c), jnp.float32),
        grid=(b, nc),
        in_specs=[
            pl.BlockSpec((1, cb, HW), lambda i, j: (i, j, 0)),   # x channel block
            pl.BlockSpec((NTOK, HW), lambda i, j: (0, 0)),       # pooling matrix
        ],
        out_specs=pl.BlockSpec((1, NTOK, cb), lambda i, j: (i, 0, j)),
        compiler_params=pltpu.CompilerParams(
            dimension_semantics=("parallel", "parallel"),
            vmem_limit_bytes=_vmem_limit(
                [((1, cb, HW), itemsize), ((NTOK, HW), 4), ((1, NTOK, cb), 4)],
                vmem_cap)),
    )(x3, win)

    # ---- kernel 2: shift = LN(rect(grouped-attention(LN(box)))) --------------
    shift = pl.pallas_call(
        functools.partial(_attend_kernel, g=g, d=d, scl=scl),
        out_shape=jax.ShapeDtypeStruct((b, NTOK, c), jnp.float32),
        grid=(b,),
        in_specs=[
            pl.BlockSpec((1, NTOK, c), lambda i: (i, 0, 0)),     # pooled box
            pl.BlockSpec((8, c), lambda i: (0, 0)),              # packed LN params
            pl.BlockSpec((c, c), lambda i: (0, 0)),              # rect weight^T (bf16)
        ],
        out_specs=pl.BlockSpec((1, NTOK, c), lambda i: (i, 0, 0)),
        scratch_shapes=[pltpu.VMEM((NTOK, c), jnp.bfloat16)],    # attention concat
        compiler_params=pltpu.CompilerParams(
            dimension_semantics=("parallel",),
            vmem_limit_bytes=_vmem_limit(
                [((1, NTOK, c), 4), ((8, c), 4), ((c, c), 2),
                 ((1, NTOK, c), 4), ((NTOK, c), 2)], vmem_cap)),
    )(box, ln_pack, rwt)

    # ---- kernel 3: out = x * sigmoid(shift + x) ------------------------------
    out3 = pl.pallas_call(
        _gate_kernel,
        out_shape=jax.ShapeDtypeStruct((b, c, HW), x.dtype),
        grid=(b, nc),
        in_specs=[
            pl.BlockSpec((1, cb, HW), lambda i, j: (i, j, 0)),   # x channel block
            pl.BlockSpec((1, NTOK, cb), lambda i, j: (i, 0, j)), # matching shift cols
            pl.BlockSpec((NTOK, HW), lambda i, j: (0, 0)),       # broadcast matrix
        ],
        out_specs=pl.BlockSpec((1, cb, HW), lambda i, j: (i, j, 0)),
        compiler_params=pltpu.CompilerParams(
            dimension_semantics=("parallel", "parallel"),
            vmem_limit_bytes=_vmem_limit(
                [((1, cb, HW), itemsize), ((1, NTOK, cb), 4), ((NTOK, HW), 4),
                 ((1, cb, HW), itemsize)], vmem_cap)),
    )(x3, shift, win)

    return out3.reshape(b, c, h, w)


# ---------------------------------------------------------------------------
# Pure-JAX reference (mirrors the PyTorch forward) and parameter init
# ---------------------------------------------------------------------------
def silutopsis_reference(x, params):
    hi = jax.lax.Precision.HIGHEST
    b, c, h, w = x.shape
    T = h // PART
    N = PART * PART
    g = max(c // 32, 1)
    d = c // g
    scl = float(d) ** -0.5

    box = x.reshape(b, c, PART, T, PART, T).mean(axis=(3, 5))      # AvgPool2d(T)
    box = box.reshape(b, c, N).transpose(0, 2, 1)                  # (b, N, c)

    q = _ln(box, params["q_w"], params["q_b"]).reshape(b, N, g, d).transpose(0, 2, 1, 3)
    k = _ln(box, params["k_w"], params["k_b"]).reshape(b, N, g, d).transpose(0, 2, 1, 3)
    v = _ln(box, params["v_w"], params["v_b"]).reshape(b, N, g, d).transpose(0, 2, 1, 3)

    sim = scl * jnp.einsum("bgnd,bgmd->bgnm", q, k, precision=hi)
    sim = jax.nn.softmax(sim, axis=-1)
    shift = jnp.einsum("bgnm,bgmd->bgnd", sim, v, precision=hi)
    shift = shift.transpose(0, 2, 1, 3).reshape(b, N, c)

    shift = jnp.einsum("bnc,dc->bnd", shift, params["rect_w"], precision=hi)
    shift = _ln(shift, params["rect_ln_w"], params["rect_ln_b"])

    shift = shift.transpose(0, 2, 1).reshape(b, c, PART, 1, PART, 1)
    xr = x.reshape(b, c, PART, T, PART, T)
    out = xr * jax.nn.sigmoid(shift + xr)
    return out.reshape(b, c, h, w)


def init_params(key, c):
    # LayerNorms: weight=1, bias=0; rect Linear: trunc_normal(std=0.02), no bias.
    rect_w = 0.02 * jax.random.truncated_normal(key, -2.0, 2.0, (c, c), jnp.float32)
    ones = jnp.ones((c,), jnp.float32)
    zeros = jnp.zeros((c,), jnp.float32)
    return dict(
        q_w=ones, q_b=zeros,
        k_w=ones, k_b=zeros,
        v_w=ones, v_b=zeros,
        rect_w=rect_w,
        rect_ln_w=ones, rect_ln_b=zeros,
    )


if __name__ == "__main__":
    # dim=64 (-> g=2, d=32), spatial=14 (-> T=2, N=49), batch=2.
    B, C, H, W = 2, 64, 14, 14
    key = jax.random.PRNGKey(0)
    kx, kp = jax.random.split(key)
    x = jax.random.normal(kx, (B, C, H, W), dtype=jnp.float32)
    params = init_params(kp, C)

    fwd = jax.jit(silutopsis_forward)
    out = fwd(x, params)
    jax.block_until_ready(out)

    ref = silutopsis_reference(x, params)
    np.testing.assert_allclose(np.asarray(out), np.asarray(ref), rtol=1e-2, atol=1e-2)

    print("KERNEL_OK")
</pallas_src>

<mosaic_0001>
module attributes {stable_mosaic.version = 11 : i64} {
  func.func @_gate_kernel(%arg0: i32, %arg1: i32, %arg2: memref<1x64x196xf32, #tpu.memory_space<vmem>>, %arg3: memref<1x49x64xf32, #tpu.memory_space<vmem>>, %arg4: memref<49x196xf32, #tpu.memory_space<vmem>>, %arg5: memref<1x64x196xf32, #tpu.memory_space<vmem>>) attributes {dimension_semantics = [#tpu.dimension_semantics<parallel>, #tpu.dimension_semantics<parallel>], iteration_bounds = array<i64: 2, 1>, scalar_prefetch = 0 : i64, scratch_operands = 0 : i64, tpu.core_type = #tpu.core_type<tc>, window_params = [{transform_indices = @transform_0, window_bounds = array<i64: 1, 64, 196>}, {transform_indices = @transform_1, window_bounds = array<i64: 1, 49, 64>}, {pipeline_mode = #tpu.pipeline_mode<synchronous>, transform_indices = @transform_2, window_bounds = array<i64: 49, 196>}, {transform_indices = @transform_3, window_bounds = array<i64: 1, 64, 196>}]} {
    %c0 = arith.constant 0 : index
    %c0_0 = arith.constant 0 : index
    %c0_1 = arith.constant 0 : index
    %0 = vector.load %arg2[%c0, %c0_0, %c0_1] : memref<1x64x196xf32, #tpu.memory_space<vmem>>, vector<1x64x196xf32>
    %1 = vector.shape_cast %0 : vector<1x64x196xf32> to vector<64x196xf32>
    %c0_2 = arith.constant 0 : index
    %c0_3 = arith.constant 0 : index
    %c0_4 = arith.constant 0 : index
    %2 = vector.load %arg3[%c0_2, %c0_3, %c0_4] : memref<1x49x64xf32, #tpu.memory_space<vmem>>, vector<1x49x64xf32>
    %3 = vector.shape_cast %2 : vector<1x49x64xf32> to vector<49x64xf32>
    %c0_5 = arith.constant 0 : index
    %c0_6 = arith.constant 0 : index
    %4 = vector.load %arg4[%c0_5, %c0_6] : memref<49x196xf32, #tpu.memory_space<vmem>>, vector<49x196xf32>
    %cst = arith.constant dense<0.000000e+00> : vector<64x196xf32>
    %5 = tpu.matmul %3, %4, %cst {dimension_numbers = #tpu.dot_dimension_numbers<[0], [0], [1], [1], [0, 1, 1, 1], [], []>} : vector<49x64xf32>, vector<49x196xf32>, vector<64x196xf32> -> vector<64x196xf32>
    %6 = arith.addf %5, %1 : vector<64x196xf32>
    %7 = arith.negf %6 : vector<64x196xf32>
    %8 = math.exp %7 : vector<64x196xf32>
    %cst_7 = arith.constant 1.000000e+00 : f32
    %9 = vector.broadcast %cst_7 : f32 to vector<64x196xf32>
    %10 = arith.addf %9, %8 : vector<64x196xf32>
    %11 = arith.divf %9, %10 : vector<64x196xf32>
    %12 = arith.mulf %1, %11 : vector<64x196xf32>
    %c0_8 = arith.constant 0 : index
    %c0_9 = arith.constant 0 : index
    %c0_10 = arith.constant 0 : index
    %13 = vector.load %arg5[%c0_8, %c0_9, %c0_10] : memref<1x64x196xf32, #tpu.memory_space<vmem>>, vector<1x64x196xf32>
    %14 = vector.shape_cast %13 : vector<1x64x196xf32> to vector<64x196xf32>
    %15 = vector.shape_cast %12 : vector<64x196xf32> to vector<1x64x196xf32>
    tpu.vector_store %arg5[%c0_8, %c0_9, %c0_10], %15 {strides = array<i32>} : memref<1x64x196xf32, #tpu.memory_space<vmem>>, vector<1x64x196xf32>,
    return
  }
  func.func @transform_0(%arg0: i32, %arg1: i32) -> (i32, i32, i32) {
    %c0_i32 = arith.constant 0 : i32
    %c0_i32_0 = arith.constant 0 : i32
    return %arg0, %arg1, %c0_i32 : i32, i32, i32
  }
  func.func @transform_1(%arg0: i32, %arg1: i32) -> (i32, i32, i32) {
    %c0_i32 = arith.constant 0 : i32
    %c0_i32_0 = arith.constant 0 : i32
    return %arg0, %c0_i32, %arg1 : i32, i32, i32
  }
  func.func @transform_2(%arg0: i32, %arg1: i32) -> (i32, i32) {
    %c0_i32 = arith.constant 0 : i32
    %c0_i32_0 = arith.constant 0 : i32
    %c0_i32_1 = arith.constant 0 : i32
    return %c0_i32, %c0_i32_0 : i32, i32
  }
  func.func @transform_3(%arg0: i32, %arg1: i32) -> (i32, i32, i32) {
    %c0_i32 = arith.constant 0 : i32
    %c0_i32_0 = arith.constant 0 : i32
    return %arg0, %arg1, %c0_i32 : i32, i32, i32
  }
}

module attributes {stable_mosaic.version = 11 : i64} {
  func.func @_pool_kernel(%arg0: i32, %arg1: i32, %arg2: memref<1x64x196xf32, #tpu.memory_space<vmem>>, %arg3: memref<49x196xf32, #tpu.memory_space<vmem>>, %arg4: memref<1x49x64xf32, #tpu.memory_space<vmem>>) attributes {dimension_semantics = [#tpu.dimension_semantics<parallel>, #tpu.dimension_semantics<parallel>], iteration_bounds = array<i64: 2, 1>, scalar_prefetch = 0 : i64, scratch_operands = 0 : i64, tpu.core_type = #tpu.core_type<tc>, window_params = [{transform_indices = @transform_0, window_bounds = array<i64: 1, 64, 196>}, {pipeline_mode = #tpu.pipeline_mode<synchronous>, transform_indices = @transform_1, window_bounds = array<i64: 49, 196>}, {transform_indices = @transform_2, window_bounds = array<i64: 1, 49, 64>}]} {
    %c0 = arith.constant 0 : index
    %c0_0 = arith.constant 0 : index
    %c0_1 = arith.constant 0 : index
    %0 = vector.load %arg2[%c0, %c0_0, %c0_1] : memref<1x64x196xf32, #tpu.memory_space<vmem>>, vector<1x64x196xf32>
    %1 = vector.shape_cast %0 : vector<1x64x196xf32> to vector<64x196xf32>
    %c0_2 = arith.constant 0 : index
    %c0_3 = arith.constant 0 : index
    %2 = vector.load %arg3[%c0_2, %c0_3] : memref<49x196xf32, #tpu.memory_space<vmem>>, vector<49x196xf32>
    %cst = arith.constant dense<0.000000e+00> : vector<49x64xf32>
    %3 = tpu.matmul %2, %1, %cst {dimension_numbers = #tpu.dot_dimension_numbers<[1], [1], [0], [0], [0, 0, 1, 0], [], []>} : vector<49x196xf32>, vector<64x196xf32>, vector<49x64xf32> -> vector<49x64xf32>
    %cst_4 = arith.constant 2.500000e-01 : f32
    %4 = vector.broadcast %cst_4 : f32 to vector<49x64xf32>
    %5 = arith.mulf %3, %4 : vector<49x64xf32>
    %c0_5 = arith.constant 0 : index
    %c0_6 = arith.constant 0 : index
    %c0_7 = arith.constant 0 : index
    %6 = vector.load %arg4[%c0_5, %c0_6, %c0_7] : memref<1x49x64xf32, #tpu.memory_space<vmem>>, vector<1x49x64xf32>
    %7 = vector.shape_cast %6 : vector<1x49x64xf32> to vector<49x64xf32>
    %8 = vector.shape_cast %5 : vector<49x64xf32> to vector<1x49x64xf32>
    tpu.vector_store %arg4[%c0_5, %c0_6, %c0_7], %8 {strides = array<i32>} : memref<1x49x64xf32, #tpu.memory_space<vmem>>, vector<1x49x64xf32>,
    return
  }
  func.func @transform_0(%arg0: i32, %arg1: i32) -> (i32, i32, i32) {
    %c0_i32 = arith.constant 0 : i32
    %c0_i32_0 = arith.constant 0 : i32
    return %arg0, %arg1, %c0_i32 : i32, i32, i32
  }
  func.func @transform_1(%arg0: i32, %arg1: i32) -> (i32, i32) {
    %c0_i32 = arith.constant 0 : i32
    %c0_i32_0 = arith.constant 0 : i32
    %c0_i32_1 = arith.constant 0 : i32
    return %c0_i32, %c0_i32_0 : i32, i32
  }
  func.func @transform_2(%arg0: i32, %arg1: i32) -> (i32, i32, i32) {
    %c0_i32 = arith.constant 0 : i32
    %c0_i32_0 = arith.constant 0 : i32
    return %arg0, %c0_i32, %arg1 : i32, i32, i32
  }
}

module attributes {stable_mosaic.version = 11 : i64} {
  func.func @_attend_kernel(%arg0: i32, %arg1: memref<1x49x64xf32, #tpu.memory_space<vmem>>, %arg2: memref<8x64xf32, #tpu.memory_space<vmem>>, %arg3: memref<64x64xbf16, #tpu.memory_space<vmem>>, %arg4: memref<1x49x64xf32, #tpu.memory_space<vmem>>, %arg5: memref<49x64xbf16, #tpu.memory_space<vmem>>) attributes {dimension_semantics = [#tpu.dimension_semantics<parallel>], iteration_bounds = array<i64: 2>, scalar_prefetch = 0 : i64, scratch_operands = 1 : i64, tpu.core_type = #tpu.core_type<tc>, window_params = [{transform_indices = @transform_0, window_bounds = array<i64: 1, 49, 64>}, {pipeline_mode = #tpu.pipeline_mode<synchronous>, transform_indices = @transform_1, window_bounds = array<i64: 8, 64>}, {pipeline_mode = #tpu.pipeline_mode<synchronous>, transform_indices = @transform_2, window_bounds = array<i64: 64, 64>}, {transform_indices = @transform_3, window_bounds = array<i64: 1, 49, 64>}]} {
    %c0 = arith.constant 0 : index
    %c0_0 = arith.constant 0 : index
    %c0_1 = arith.constant 0 : index
    %0 = vector.load %arg1[%c0, %c0_0, %c0_1] : memref<1x49x64xf32, #tpu.memory_space<vmem>>, vector<1x49x64xf32>
    %1 = vector.shape_cast %0 : vector<1x49x64xf32> to vector<49x64xf32>
    %c0_2 = arith.constant 0 : index
    %c0_3 = arith.constant 0 : index
    %2 = vector.load %arg2[%c0_2, %c0_3] : memref<8x64xf32, #tpu.memory_space<vmem>>, vector<8x64xf32>
    %3 = vector.extract_strided_slice %2 {offsets = [0, 0], sizes = [1, 64], strides = [1, 1]} : vector<8x64xf32> to vector<1x64xf32>
    %4 = vector.shape_cast %3 : vector<1x64xf32> to vector<64xf32>
    %5 = vector.extract_strided_slice %2 {offsets = [1, 0], sizes = [1, 64], strides = [1, 1]} : vector<8x64xf32> to vector<1x64xf32>
    %6 = vector.shape_cast %5 : vector<1x64xf32> to vector<64xf32>
    %cst = arith.constant dense<0.000000e+00> : vector<49xf32>
    %7 = vector.multi_reduction <add>, %1, %cst [1] : vector<49x64xf32> to vector<49xf32>
    %8 = vector.shape_cast %7 : vector<49xf32> to vector<49x1xf32>
    %cst_4 = arith.constant 6.400000e+01 : f32
    %9 = vector.broadcast %cst_4 : f32 to vector<49x1xf32>
    %10 = arith.divf %8, %9 : vector<49x1xf32>
    %11 = vector.broadcast %10 : vector<49x1xf32> to vector<49x64xf32>
    %12 = arith.subf %1, %11 : vector<49x64xf32>
    %13 = arith.mulf %12, %12 : vector<49x64xf32>
    %cst_5 = arith.constant dense<0.000000e+00> : vector<49xf32>
    %14 = vector.multi_reduction <add>, %13, %cst_5 [1] : vector<49x64xf32> to vector<49xf32>
    %15 = vector.shape_cast %14 : vector<49xf32> to vector<49x1xf32>
    %cst_6 = arith.constant 6.400000e+01 : f32
    %16 = vector.broadcast %cst_6 : f32 to vector<49x1xf32>
    %17 = arith.divf %15, %16 : vector<49x1xf32>
    %18 = vector.broadcast %10 : vector<49x1xf32> to vector<49x64xf32>
    %19 = arith.subf %1, %18 : vector<49x64xf32>
    %cst_7 = arith.constant 9.99999997E-7 : f32
    %20 = vector.broadcast %cst_7 : f32 to vector<49x1xf32>
    %21 = arith.addf %17, %20 : vector<49x1xf32>
    %22 = math.rsqrt %21 : vector<49x1xf32>
    %23 = vector.broadcast %22 : vector<49x1xf32> to vector<49x64xf32>
    %24 = arith.mulf %19, %23 : vector<49x64xf32>
    %25 = vector.shape_cast %4 : vector<64xf32> to vector<1x64xf32>
    %26 = vector.broadcast %25 : vector<1x64xf32> to vector<49x64xf32>
    %27 = arith.mulf %24, %26 : vector<49x64xf32>
    %28 = vector.shape_cast %6 : vector<64xf32> to vector<1x64xf32>
    %29 = vector.broadcast %28 : vector<1x64xf32> to vector<49x64xf32>
    %30 = arith.addf %27, %29 : vector<49x64xf32>
    %cst_8 = arith.constant 0.176776692 : f32
    %31 = vector.broadcast %cst_8 : f32 to vector<49x64xf32>
    %32 = arith.mulf %30, %31 : vector<49x64xf32>
    %33 = vector.extract_strided_slice %2 {offsets = [2, 0], sizes = [1, 64], strides = [1, 1]} : vector<8x64xf32> to vector<1x64xf32>
    %34 = vector.shape_cast %33 : vector<1x64xf32> to vector<64xf32>
    %35 = vector.extract_strided_slice %2 {offsets = [3, 0], sizes = [1, 64], strides = [1, 1]} : vector<8x64xf32> to vector<1x64xf32>
    %36 = vector.shape_cast %35 : vector<1x64xf32> to vector<64xf32>
    %cst_9 = arith.constant dense<0.000000e+00> : vector<49xf32>
    %37 = vector.multi_reduction <add>, %1, %cst_9 [1] : vector<49x64xf32> to vector<49xf32>
    %38 = vector.shape_cast %37 : vector<49xf32> to vector<49x1xf32>
    %cst_10 = arith.constant 6.400000e+01 : f32
    %39 = vector.broadcast %cst_10 : f32 to vector<49x1xf32>
    %40 = arith.divf %38, %39 : vector<49x1xf32>
    %41 = vector.broadcast %40 : vector<49x1xf32> to vector<49x64xf32>
    %42 = arith.subf %1, %41 : vector<49x64xf32>
    %43 = arith.mulf %42, %42 : vector<49x64xf32>
    %cst_11 = arith.constant dense<0.000000e+00> : vector<49xf32>
    %44 = vector.multi_reduction <add>, %43, %cst_11 [1] : vector<49x64xf32> to vector<49xf32>
    %45 = vector.shape_cast %44 : vector<49xf32> to vector<49x1xf32>
    %cst_12 = arith.constant 6.400000e+01 : f32
    %46 = vector.broadcast %cst_12 : f32 to vector<49x1xf32>
    %47 = arith.divf %45, %46 : vector<49x1xf32>
    %48 = vector.broadcast %40 : vector<49x1xf32> to vector<49x64xf32>
    %49 = arith.subf %1, %48 : vector<49x64xf32>
    %cst_13 = arith.constant 9.99999997E-7 : f32
    %50 = vector.broadcast %cst_13 : f32 to vector<49x1xf32>
    %51 = arith.addf %47, %50 : vector<49x1xf32>
    %52 = math.rsqrt %51 : vector<49x1xf32>
    %53 = vector.broadcast %52 : vector<49x1xf32> to vector<49x64xf32>
    %54 = arith.mulf %49, %53 : vector<49x64xf32>
    %55 = vector.shape_cast %34 : vector<64xf32> to vector<1x64xf32>
    %56 = vector.broadcast %55 : vector<1x64xf32> to vector<49x64xf32>
    %57 = arith.mulf %54, %56 : vector<49x64xf32>
    %58 = vector.shape_cast %36 : vector<64xf32> to vector<1x64xf32>
    %59 = vector.broadcast %58 : vector<1x64xf32> to vector<49x64xf32>
    %60 = arith.addf %57, %59 : vector<49x64xf32>
    %61 = vector.extract_strided_slice %2 {offsets = [4, 0], sizes = [1, 64], strides = [1, 1]} : vector<8x64xf32> to vector<1x64xf32>
    %62 = vector.shape_cast %61 : vector<1x64xf32> to vector<64xf32>
    %63 = vector.extract_strided_slice %2 {offsets = [5, 0], sizes = [1, 64], strides = [1, 1]} : vector<8x64xf32> to vector<1x64xf32>
    %64 = vector.shape_cast %63 : vector<1x64xf32> to vector<64xf32>
    %cst_14 = arith.constant dense<0.000000e+00> : vector<49xf32>
    %65 = vector.multi_reduction <add>, %1, %cst_14 [1] : vector<49x64xf32> to vector<49xf32>
    %66 = vector.shape_cast %65 : vector<49xf32> to vector<49x1xf32>
    %cst_15 = arith.constant 6.400000e+01 : f32
    %67 = vector.broadcast %cst_15 : f32 to vector<49x1xf32>
    %68 = arith.divf %66, %67 : vector<49x1xf32>
    %69 = vector.broadcast %68 : vector<49x1xf32> to vector<49x64xf32>
    %70 = arith.subf %1, %69 : vector<49x64xf32>
    %71 = arith.mulf %70, %70 : vector<49x64xf32>
    %cst_16 = arith.constant dense<0.000000e+00> : vector<49xf32>
    %72 = vector.multi_reduction <add>, %71, %cst_16 [1] : vector<49x64xf32> to vector<49xf32>
    %73 = vector.shape_cast %72 : vector<49xf32> to vector<49x1xf32>
    %cst_17 = arith.constant 6.400000e+01 : f32
    %74 = vector.broadcast %cst_17 : f32 to vector<49x1xf32>
    %75 = arith.divf %73, %74 : vector<49x1xf32>
    %76 = vector.broadcast %68 : vector<49x1xf32> to vector<49x64xf32>
    %77 = arith.subf %1, %76 : vector<49x64xf32>
    %cst_18 = arith.constant 9.99999997E-7 : f32
    %78 = vector.broadcast %cst_18 : f32 to vector<49x1xf32>
    %79 = arith.addf %75, %78 : vector<49x1xf32>
    %80 = math.rsqrt %79 : vector<49x1xf32>
    %81 = vector.broadcast %80 : vector<49x1xf32> to vector<49x64xf32>
    %82 = arith.mulf %77, %81 : vector<49x64xf32>
    %83 = vector.shape_cast %62 : vector<64xf32> to vector<1x64xf32>
    %84 = vector.broadcast %83 : vector<1x64xf32> to vector<49x64xf32>
    %85 = arith.mulf %82, %84 : vector<49x64xf32>
    %86 = vector.shape_cast %64 : vector<64xf32> to vector<1x64xf32>
    %87 = vector.broadcast %86 : vector<1x64xf32> to vector<49x64xf32>
    %88 = arith.addf %85, %87 : vector<49x64xf32>
    %89 = vector.extract_strided_slice %32 {offsets = [0, 0], sizes = [49, 32], strides = [1, 1]} : vector<49x64xf32> to vector<49x32xf32>
    %90 = vector.extract_strided_slice %60 {offsets = [0, 0], sizes = [49, 32], strides = [1, 1]} : vector<49x64xf32> to vector<49x32xf32>
    %91 = vector.extract_strided_slice %88 {offsets = [0, 0], sizes = [49, 32], strides = [1, 1]} : vector<49x64xf32> to vector<49x32xf32>
    %cst_19 = arith.constant dense<0.000000e+00> : vector<49x49xf32>
    %92 = tpu.matmul %89, %90, %cst_19 {dimension_numbers = #tpu.dot_dimension_numbers<[1], [1], [0], [0], [0, 0, 1, 0], [], []>} : vector<49x32xf32>, vector<49x32xf32>, vector<49x49xf32> -> vector<49x49xf32>
    %cst_20 = arith.constant dense<0xFF800000> : vector<49xf32>
    %93 = vector.multi_reduction <maximumf>, %92, %cst_20 [1] : vector<49x49xf32> to vector<49xf32>
    %cst_21 = arith.constant 0xFF800000 : f32
    %94 = vector.broadcast %cst_21 : f32 to vector<49xf32>
    %95 = arith.maximumf %94, %93 : vector<49xf32>
    %96 = vector.shape_cast %95 : vector<49xf32> to vector<49x1xf32>
    %97 = vector.broadcast %96 : vector<49x1xf32> to vector<49x49xf32>
    %98 = arith.subf %92, %97 : vector<49x49xf32>
    %99 = math.exp %98 : vector<49x49xf32>
    %cst_22 = arith.constant dense<0.000000e+00> : vector<49xf32>
    %100 = vector.multi_reduction <add>, %99, %cst_22 [1] : vector<49x49xf32> to vector<49xf32>
    %101 = vector.shape_cast %100 : vector<49xf32> to vector<49x1xf32>
    %102 = vector.broadcast %101 : vector<49x1xf32> to vector<49x49xf32>
    %103 = arith.divf %99, %102 : vector<49x49xf32>
    %cst_23 = arith.constant dense<0.000000e+00> : vector<49x32xf32>
    %104 = tpu.matmul %103, %91, %cst_23 {dimension_numbers = #tpu.dot_dimension_numbers<[1], [0], [0], [1], [0, 0, 1, 1], [], []>} : vector<49x49xf32>, vector<49x32xf32>, vector<49x32xf32> -> vector<49x32xf32>
    %105 = arith.truncf %104 : vector<49x32xf32> to vector<49x32xbf16>
    %c0_24 = arith.constant 0 : index
    %c0_25 = arith.constant 0 : index
    %106 = vector.load %arg5[%c0_24, %c0_25] : memref<49x64xbf16, #tpu.memory_space<vmem>>, vector<49x32xbf16>
    tpu.vector_store %arg5[%c0_24, %c0_25], %105 {strides = array<i32>} : memref<49x64xbf16, #tpu.memory_space<vmem>>, vector<49x32xbf16>,
    %107 = vector.extract_strided_slice %32 {offsets = [0, 32], sizes = [49, 32], strides = [1, 1]} : vector<49x64xf32> to vector<49x32xf32>
    %108 = vector.extract_strided_slice %60 {offsets = [0, 32], sizes = [49, 32], strides = [1, 1]} : vector<49x64xf32> to vector<49x32xf32>
    %109 = vector.extract_strided_slice %88 {offsets = [0, 32], sizes = [49, 32], strides = [1, 1]} : vector<49x64xf32> to vector<49x32xf32>
    %cst_26 = arith.constant dense<0.000000e+00> : vector<49x49xf32>
    %110 = tpu.matmul %107, %108, %cst_26 {dimension_numbers = #tpu.dot_dimension_numbers<[1], [1], [0], [0], [0, 0, 1, 0], [], []>} : vector<49x32xf32>, vector<49x32xf32>, vector<49x49xf32> -> vector<49x49xf32>
    %cst_27 = arith.constant dense<0xFF800000> : vector<49xf32>
    %111 = vector.multi_reduction <maximumf>, %110, %cst_27 [1] : vector<49x49xf32> to vector<49xf32>
    %cst_28 = arith.constant 0xFF800000 : f32
    %112 = vector.broadcast %cst_28 : f32 to vector<49xf32>
    %113 = arith.maximumf %112, %111 : vector<49xf32>
    %114 = vector.shape_cast %113 : vector<49xf32> to vector<49x1xf32>
    %115 = vector.broadcast %114 : vector<49x1xf32> to vector<49x49xf32>
    %116 = arith.subf %110, %115 : vector<49x49xf32>
    %117 = math.exp %116 : vector<49x49xf32>
    %cst_29 = arith.constant dense<0.000000e+00> : vector<49xf32>
    %118 = vector.multi_reduction <add>, %117, %cst_29 [1] : vector<49x49xf32> to vector<49xf32>
    %119 = vector.shape_cast %118 : vector<49xf32> to vector<49x1xf32>
    %120 = vector.broadcast %119 : vector<49x1xf32> to vector<49x49xf32>
    %121 = arith.divf %117, %120 : vector<49x49xf32>
    %cst_30 = arith.constant dense<0.000000e+00> : vector<49x32xf32>
    %122 = tpu.matmul %121, %109, %cst_30 {dimension_numbers = #tpu.dot_dimension_numbers<[1], [0], [0], [1], [0, 0, 1, 1], [], []>} : vector<49x49xf32>, vector<49x32xf32>, vector<49x32xf32> -> vector<49x32xf32>
    %123 = arith.truncf %122 : vector<49x32xf32> to vector<49x32xbf16>
    %c0_31 = arith.constant 0 : index
    %c32 = arith.constant 32 : index
    %124 = vector.load %arg5[%c0_31, %c32] : memref<49x64xbf16, #tpu.memory_space<vmem>>, vector<49x32xbf16>
    tpu.vector_store %arg5[%c0_31, %c32], %123 {strides = array<i32>} : memref<49x64xbf16, #tpu.memory_space<vmem>>, vector<49x32xbf16>,
    %c0_32 = arith.constant 0 : index
    %c0_33 = arith.constant 0 : index
    %125 = vector.load %arg5[%c0_32, %c0_33] : memref<49x64xbf16, #tpu.memory_space<vmem>>, vector<49x64xbf16>
    %c0_34 = arith.constant 0 : index
    %c0_35 = arith.constant 0 : index
    %126 = vector.load %arg3[%c0_34, %c0_35] : memref<64x64xbf16, #tpu.memory_space<vmem>>, vector<64x64xbf16>
    %cst_36 = arith.constant dense<0.000000e+00> : vector<49x64xf32>
    %127 = tpu.matmul %125, %126, %cst_36 {dimension_numbers = #tpu.dot_dimension_numbers<[1], [0], [0], [1], [0, 0, 1, 1], [], []>} : vector<49x64xbf16>, vector<64x64xbf16>, vector<49x64xf32> -> vector<49x64xf32>
    %128 = vector.extract_strided_slice %2 {offsets = [6, 0], sizes = [1, 64], strides = [1, 1]} : vector<8x64xf32> to vector<1x64xf32>
    %129 = vector.shape_cast %128 : vector<1x64xf32> to vector<64xf32>
    %130 = vector.extract_strided_slice %2 {offsets = [7, 0], sizes = [1, 64], strides = [1, 1]} : vector<8x64xf32> to vector<1x64xf32>
    %131 = vector.shape_cast %130 : vector<1x64xf32> to vector<64xf32>
    %cst_37 = arith.constant dense<0.000000e+00> : vector<49xf32>
    %132 = vector.multi_reduction <add>, %127, %cst_37 [1] : vector<49x64xf32> to vector<49xf32>
    %133 = vector.shape_cast %132 : vector<49xf32> to vector<49x1xf32>
    %cst_38 = arith.constant 6.400000e+01 : f32
    %134 = vector.broadcast %cst_38 : f32 to vector<49x1xf32>
    %135 = arith.divf %133, %134 : vector<49x1xf32>
    %136 = vector.broadcast %135 : vector<49x1xf32> to vector<49x64xf32>
    %137 = arith.subf %127, %136 : vector<49x64xf32>
    %138 = arith.mulf %137, %137 : vector<49x64xf32>
    %cst_39 = arith.constant dense<0.000000e+00> : vector<49xf32>
    %139 = vector.multi_reduction <add>, %138, %cst_39 [1] : vector<49x64xf32> to vector<49xf32>
    %140 = vector.shape_cast %139 : vector<49xf32> to vector<49x1xf32>
    %cst_40 = arith.constant 6.400000e+01 : f32
    %141 = vector.broadcast %cst_40 : f32 to vector<49x1xf32>
    %142 = arith.divf %140, %141 : vector<49x1xf32>
    %143 = vector.broadcast %135 : vector<49x1xf32> to vector<49x64xf32>
    %144 = arith.subf %127, %143 : vector<49x64xf32>
    %cst_41 = arith.constant 9.99999997E-7 : f32
    %145 = vector.broadcast %cst_41 : f32 to vector<49x1xf32>
    %146 = arith.addf %142, %145 : vector<49x1xf32>
    %147 = math.rsqrt %146 : vector<49x1xf32>
    %148 = vector.broadcast %147 : vector<49x1xf32> to vector<49x64xf32>
    %149 = arith.mulf %144, %148 : vector<49x64xf32>
    %150 = vector.shape_cast %129 : vector<64xf32> to vector<1x64xf32>
    %151 = vector.broadcast %150 : vector<1x64xf32> to vector<49x64xf32>
    %152 = arith.mulf %149, %151 : vector<49x64xf32>
    %153 = vector.shape_cast %131 : vector<64xf32> to vector<1x64xf32>
    %154 = vector.broadcast %153 : vector<1x64xf32> to vector<49x64xf32>
    %155 = arith.addf %152, %154 : vector<49x64xf32>
    %c0_42 = arith.constant 0 : index
    %c0_43 = arith.constant 0 : index
    %c0_44 = arith.constant 0 : index
    %156 = vector.load %arg4[%c0_42, %c0_43, %c0_44] : memref<1x49x64xf32, #tpu.memory_space<vmem>>, vector<1x49x64xf32>
    %157 = vector.shape_cast %156 : vector<1x49x64xf32> to vector<49x64xf32>
    %158 = vector.shape_cast %155 : vector<49x64xf32> to vector<1x49x64xf32>
    tpu.vector_store %arg4[%c0_42, %c0_43, %c0_44], %158 {strides = array<i32>} : memref<1x49x64xf32, #tpu.memory_space<vmem>>, vector<1x49x64xf32>,
    return
  }
  func.func @transform_0(%arg0: i32) -> (i32, i32, i32) {
    %c0_i32 = arith.constant 0 : i32
    %c0_i32_0 = arith.constant 0 : i32
    %c0_i32_1 = arith.constant 0 : i32
    return %arg0, %c0_i32, %c0_i32_0 : i32, i32, i32
  }
  func.func @transform_1(%arg0: i32) -> (i32, i32) {
    %c0_i32 = arith.constant 0 : i32
    %c0_i32_0 = arith.constant 0 : i32
    %c0_i32_1 = arith.constant 0 : i32
    return %c0_i32, %c0_i32_0 : i32, i32
  }
  func.func @transform_2(%arg0: i32) -> (i32, i32) {
    %c0_i32 = arith.constant 0 : i32
    %c0_i32_0 = arith.constant 0 : i32
    %c0_i32_1 = arith.constant 0 : i32
    return %c0_i32, %c0_i32_0 : i32, i32
  }
  func.func @transform_3(%arg0: i32) -> (i32, i32, i32) {
    %c0_i32 = arith.constant 0 : i32
    %c0_i32_0 = arith.constant 0 : i32
    %c0_i32_1 = arith.constant 0 : i32
    return %arg0, %c0_i32, %c0_i32_0 : i32, i32, i32
  }
}

</mosaic_0001>

<bundles_post_ra>
// kernel: silutopsis_forward.3
= control target key start
LH: loop header
LB: loop body
LE: loop exit
PB: predicated region body
PF: predicated region fallthrough
CT: control target
= control target key end

     0   :  { %s579_s9 = smov 0   ;;  %s581_s10 = smov 0   ;;  %s711_s0 = inlined_call_operand.vmem [shape: f32[2,64,196], index: 0, kind: input, shape index: {}]   ;;  %s712_s1 = inlined_call_operand.vmem [shape: f32[49,196], index: 1, kind: input, shape index: {}]   ;;  %s713_s2 = inlined_call_operand.vmem [shape: f32[2,49,64], index: 2, kind: output, shape index: {}]  }
   0x1   :  { %s583_s11 = smov 0  }
   0x2 LB: > { %s24_s12 = sadd.s32 1, %s558_s10  ;;  %p465_p0 = scmp.ge.s32.totalorder %s562_s11, 1  ;;  %s562_s11 = sphi %s583_s11, %s12_s11   ;;  %s558_s10 = sphi %s581_s10, %s717_s10   ;;  %s554_s9 = sphi %s579_s9, %s716_s9  }
   0x3   : > { %p26_p1 = scmp.ge.s32.totalorder %s24_s12, 2  ;;  %p134_p2 = scmp.lt.s32.totalorder %s562_s11, 3 }
   0x5   : > { %s719_s12 = smov (%p26_p1, %s24_s12), 0  ;;  %p135_p3 = pnand %p465_p0, %p134_p2 }
   0x6   : > { %p165_p4 = scmp.lt.s32.totalorder (!%p135_p3), %s554_s9, 1  ;;  %vm213_vm0 = vcmask (!%p135_p3), 556032   ;;  %v200_v0 = vld [vmem:[%s712_s1 + $0x8] sm:$0xff] (!%p135_p3)  ;;  %v199_v27 = vld [vmem:[%s712_s1] sm:$0xff] (!%p135_p3)  ;;  %v202_v29 = vld [vmem:[%s712_s1 + $0x18] sm:$0xff] (!%p135_p3)  ;;  %vm366_vm2 = vcmask (!%p135_p3), 523264  }
   0x7   : > { %138 = sbr.rel (%p135_p3) target bundleno = 279 (0x117), region = 28  ;;  %v208_v1 = vld [vmem:[%s712_s1 + $0x48] sm:$0xff] (!%p135_p3)  ;;  %477 = vmatprep.mubr.msk.f32.mxu0 (!%p135_p3), %vm213_vm0, %v200_v0  ;;  %vm615_vm1 = vmpackc.low (!%p135_p3), %vm213_vm0, %vm213_vm0  ;;  %v207_v28 = vld [vmem:[%s712_s1 + $0x40] sm:$0xff] (!%p135_p3)  ;;  %vm373_vm3 = vcmask (!%p135_p3), 516096  }
   0x8   : > { %481 = vmatprep.mubr.msk.f32.mxu1 (!%p135_p3), %vm213_vm0, %v208_v1  ;;  %v210_v30 = vld [vmem:[%s712_s1 + $0x58] sm:$0xff] (!%p135_p3)  ;;  %v201_v31 = vld [vmem:[%s712_s1 + $0x10] sm:$0xff] (!%p135_p3)  ;;  %v204_v33 = vld [vmem:[%s712_s1 + $0x28] sm:$0xff] (!%p135_p3) }
   0x9   : > { %v209_v32 = vld [vmem:[%s712_s1 + $0x50] sm:$0xff] (!%p135_p3)  ;;  %v212_v34 = vld [vmem:[%s712_s1 + $0x68] sm:$0x1] (!%p135_p3)  ;;  %v203_v35 = vld [vmem:[%s712_s1 + $0x20] sm:$0xff] (!%p135_p3) }
   0xa   : > { %v211_v36 = vld [vmem:[%s712_s1 + $0x60] sm:$0x1] (!%p135_p3)  ;;  %v206_v37 = vld [vmem:[%s712_s1 + $0x38] sm:$0xff] (!%p135_p3)  ;;  %v205_v38 = vld [vmem:[%s712_s1 + $0x30] sm:$0xff] (!%p135_p3) }
   0xe   : > { %s721_s9 = smov (!%p165_p4, %s554_s9), 1 }
   0xf   : > { %s486_s17 = sshll.u32 %s721_s9, 7  ;;  %s515_s21 = smul.u32 56, %s721_s9 }
  0x10   : > { %s611_s20 = scalar_lea.vmem %s711_s0, %s486_s17 }
  0x11   : > { %v184_v3 = vld [vmem:[%s611_s20 + $0x8] sm:$0xff]  ;;  %v186_v4 = vld [vmem:[%s611_s20 + $0x18] sm:$0xff]  ;;  %v183_v5 = vld [vmem:[%s611_s20] sm:$0xff]  ;;  %s182_s24 = scalar_lea.vmem %s713_s2, %s515_s21 }
  0x12   : > { %v487_v6 = vpack.c.bf16 %v186_v4, %v184_v3  ;;  %v185_v7 = vld [vmem:[%s611_s20 + $0x10] sm:$0xff]  ;;  %v188_v8 = vld [vmem:[%s611_s20 + $0x28] sm:$0xff]  ;;  %v190_v9 = vld [vmem:[%s611_s20 + $0x38] sm:$0xff] }
  0x13   : > { %v490_v10 = vpack.c.bf16 %v185_v7, %v183_v5  ;;  %v492_v11 = vpack.c.bf16 %v190_v9, %v188_v8  ;;  %v187_v12 = vld [vmem:[%s611_s20 + $0x20] sm:$0xff]  ;;  %v189_v13 = vld [vmem:[%s611_s20 + $0x30] sm:$0xff]  ;;  %v192_v14 = vld [vmem:[%s611_s20 + $0x48] sm:$0xff] }
  0x14   : > { %489 = vmatprep.subr.msk.bf16.mxu0 %vm615_vm1, %v487_v6  ;;  %507 = vmatprep.subr.msk.bf16.mxu1 %vm615_vm1, %v487_v6  ;;  %v194_v15 = vld [vmem:[%s611_s20 + $0x58] sm:$0xff]  ;;  %v495_v16 = vpack.c.bf16 %v189_v13, %v187_v12  ;;  %v191_v18 = vld [vmem:[%s611_s20 + $0x40] sm:$0xff]  ;;  %v193_v19 = vld [vmem:[%s611_s20 + $0x50] sm:$0xff] }
  0x15   : > { %491 = vmatpush1.bf16.xpose.msra.mxu0 %v490_v10  ;;  %511 = vmatpush1.bf16.xpose.msra.mxu1 %v490_v10  ;;  %v497_v17 = vpack.c.bf16 %v194_v15, %v192_v14  ;;  %v196_v20 = vld [vmem:[%s611_s20 + $0x68] sm:$0xff]  ;;  %v198_v21 = vld [vmem:[%s611_s20 + $0x78] sm:$0xff]  ;;  %v500_v22 = vpack.c.bf16 %v193_v19, %v191_v18  ;;  %v195_v24 = vld [vmem:[%s611_s20 + $0x60] sm:$0xff] }
  0x16   : > { %494 = vmatprep.subr.msk.bf16.mxu0 %vm615_vm1, %v492_v11  ;;  %508 = vmatprep.subr.msk.bf16.mxu1 %vm615_vm1, %v492_v11  ;;  %v502_v23 = vpack.c.bf16 %v198_v21, %v196_v20  ;;  %v197_v25 = vld [vmem:[%s611_s20 + $0x70] sm:$0xff] }
  0x17   : > { %v505_v26 = vpack.c.bf16 %v197_v25, %v195_v24 }
  0x1d   : > { %496 = vmatpush1.bf16.xpose.msra.mxu0 %v495_v16  ;;  %512 = vmatpush1.bf16.xpose.msra.mxu1 %v495_v16 }
  0x1e   : > { %499 = vmatprep.subr.msk.bf16.mxu0 %vm615_vm1, %v497_v17  ;;  %509 = vmatprep.subr.msk.bf16.mxu1 %vm615_vm1, %v497_v17 }
  0x25   : > { %501 = vmatpush1.bf16.xpose.msra.mxu0 %v500_v22  ;;  %513 = vmatpush1.bf16.xpose.msra.mxu1 %v500_v22 }
  0x26   : > { %504 = vmatprep.subr.msk.bf16.mxu0 %vm615_vm1, %v502_v23  ;;  %510 = vmatprep.subr.msk.bf16.mxu1 %vm615_vm1, %v502_v23 }
  0x2d   : > { %506 = vmatpush1.bf16.xpose.msra.mxu0 %v505_v26  ;;  %514 = vmatpush1.bf16.xpose.msra.mxu1 %v505_v26 }
  0x34   : > { %324 = vmatmul.mubr.f32.vlgmr.msra.gmra.mrb[0].mxu0 %v199_v27  ;;  %344 = vmatmul.mubr.f32.vlgmr.msra.gmra.mrb[0].mxu1 %v207_v28 }
  0x35   : > { %478 = vmatprep.mubr.msk.f32.mxu0 %vm213_vm0, %v202_v29  ;;  %482 = vmatprep.mubr.msk.f32.mxu1 %vm213_vm0, %v210_v30 }
  0x38   : > { %329 = vmatmul.mubr.f32.gmra.mrb[2].mxu0 %v201_v31  ;;  %349 = vmatmul.mubr.f32.gmra.mrb[2].mxu1 %v209_v32 }
  0x39   : > { %479 = vmatprep.mubr.msk.f32.mxu0 %vm213_vm0, %v204_v33  ;;  %483 = vmatprep.mubr.msk.f32.mxu1 %vm213_vm0, %v212_v34 }
  0x3c   : > { %334 = vmatmul.mubr.f32.gmra.mrb[4].mxu0 %v203_v35  ;;  %354 = vmatmul.mubr.f32.gmra.mrb[4].mxu1 %v211_v36 }
  0x3d   : > { %480 = vmatprep.mubr.msk.f32.mxu0 %vm213_vm0, %v206_v37 }
  0x40   : > { %339 = vmatmul.mubr.f32.gmra.mrb[6].mxu0 %v205_v38 }
 0x107   : > { %v325_v39 = vpop.f32.mrb[0].mxu0  ;;  %v345_v40 = vpop.f32.mrb[0].mxu1 }
 0x108   : > { %v359_v41 = vmul.f32 0.25, %v325_v39  ;;  %v327_v42 = vpop.f32.mrb[1].mxu0  ;;  %v363_v43 = vmul.f32 0.25, %v345_v40  ;;  %v347_v44 = vpop.f32.mrb[1].mxu1 }
 0x10a   : > { %367 = vst.msk [vmem:[%s182_s24] sm:$0xff] %vm366_vm2, %v359_v41  ;;  %371 = vst.msk [vmem:[%s182_s24 + $0x20] sm:$0xff] %vm366_vm2, %v363_v43 }
 0x10b   : > { %v330_v45 = vpop.f32.mrb[2].mxu0  ;;  %v350_v46 = vpop.f32.mrb[2].mxu1 }
 0x10c   : > { %v360_v47 = vmul.f32 0.25, %v330_v45  ;;  %v332_v48 = vpop.f32.mrb[3].mxu0  ;;  %v364_v49 = vmul.f32 0.25, %v350_v46  ;;  %v352_v50 = vpop.f32.mrb[3].mxu1 }
 0x10e   : > { %368 = vst.msk [vmem:[%s182_s24 + $0x8] sm:$0xff] %vm366_vm2, %v360_v47  ;;  %372 = vst.msk [vmem:[%s182_s24 + $0x28] sm:$0xff] %vm366_vm2, %v364_v49 }
 0x10f   : > { %v335_v51 = vpop.f32.mrb[4].mxu0  ;;  %v355_v52 = vpop.f32.mrb[4].mxu1 }
 0x110   : > { %v361_v53 = vmul.f32 0.25, %v335_v51  ;;  %v337_v54 = vpop.f32.mrb[5].mxu0  ;;  %v365_v55 = vmul.f32 0.25, %v355_v52  ;;  %v357_v56 = vpop.f32.mrb[5].mxu1 }
 0x112   : > { %369 = vst.msk [vmem:[%s182_s24 + $0x10] sm:$0xff] %vm366_vm2, %v361_v53 }
 0x113   : > { %374 = vst.msk [vmem:[%s182_s24 + $0x30] sm:$0x1] %vm373_vm3, %v365_v55  ;;  %v340_v57 = vpop.f32.mrb[6].mxu0 }
 0x114   : > { %v362_v58 = vmul.f32 0.25, %v340_v57  ;;  %v342_v59 = vpop.f32.mrb[7].mxu0 }
 0x116   : > { %370 = vst.msk [vmem:[%s182_s24 + $0x18] sm:$0xff] %vm366_vm2, %v362_v58 }
 0x117 PF: > { %s12_s11 = sadd.s32 1, %s562_s11   ;;  %s716_s9 = smov %s558_s10 }
 0x118   : > { %p9_p5 = scmp.ge.s32.totalorder %s12_s11, 4   ;;  %s717_s10 = smov %s719_s12 }
 0x11a   :  { %11 = sbr.rel (!%p9_p5) target bundleno = 2 (0x2), region = 58 }

// kernel: silutopsis_forward.5
= control target key start
LH: loop header
LB: loop body
LE: loop exit
PB: predicated region body
PF: predicated region fallthrough
CT: control target
= control target key end

     0   :  { %s898_s12 = smov 0   ;;  %s900_s13 = smov 0   ;;  %s1108_s0 = inlined_call_operand.vmem [shape: f32[2,64,196], index: 0, kind: input, shape index: {}]   ;;  %s1109_s1 = inlined_call_operand.vmem [shape: f32[2,49,64], index: 1, kind: input, shape index: {}]   ;;  %s1110_s2 = inlined_call_operand.vmem [shape: f32[49,196], index: 2, kind: input, shape index: {}]   ;;  %s1111_s3 = inlined_call_operand.vmem [shape: f32[2,64,196], index: 3, kind: output, shape index: {}]  }
   0x1   :  { %s902_s14 = smov 0  }
   0x2 LB: > { %s25_s15 = sadd.s32 1, %s871_s13  ;;  %p707_p0 = scmp.ge.s32.totalorder %s875_s14, 1  ;;  %s875_s14 = sphi %s902_s14, %s13_s14   ;;  %s871_s13 = sphi %s900_s13, %s1113_s13   ;;  %s867_s12 = sphi %s898_s12, %s1112_s12  }
   0x3   : > { %p27_p1 = scmp.ge.s32.totalorder %s25_s15, 2  ;;  %p174_p2 = scmp.lt.s32.totalorder %s875_s14, 3 }
   0x5   : > { %s1115_s15 = smov (%p27_p1, %s25_s15), 0  ;;  %p175_p3 = pnand %p707_p0, %p174_p2 }
   0x6   : > { %p217_p4 = scmp.lt.s32.totalorder (!%p175_p3), %s867_s12, 1  ;;  %v270_v0 = vld [vmem:[%s1110_s2 + $0x8] sm:$0xff] (!%p175_p3)  ;;  %v272_v1 = vld [vmem:[%s1110_s2 + $0x18] sm:$0xff] (!%p175_p3)  ;;  %v269_v2 = vld [vmem:[%s1110_s2] sm:$0xff] (!%p175_p3)  ;;  %v877_v7 = vmov (!%p175_p3), 0.0   ;;  %vm340_vm0 = vcmask (!%p175_p3), 1040384  }
   0x7   : > { %178 = sbr.rel (%p175_p3) target bundleno = 422 (0x1a6), region = 32  ;;  %v743_v3 = vpack.c.bf16 (!%p175_p3), %v272_v1, %v270_v0  ;;  %v271_v4 = vld [vmem:[%s1110_s2 + $0x10] sm:$0xff] (!%p175_p3)  ;;  %v274_v5 = vld [vmem:[%s1110_s2 + $0x28] sm:$0xff] (!%p175_p3)  ;;  %v276_v6 = vld [vmem:[%s1110_s2 + $0x38] sm:$0xff] (!%p175_p3)  ;;  %411 = vmatprep.mubr.f32.mxu0 (!%p175_p3), %v877_v7  ;;  %435 = vmatprep.mubr.f32.mxu1 (!%p175_p3), %v877_v7  ;;  %vm315_vm1 = vcmask (!%p175_p3), 400384   ;;  %vm573_vm2 = vcmask (!%p175_p3), 556032  }
   0x8   : > { %v745_v8 = vpack.c.bf16 (!%p175_p3), %v271_v4, %v269_v2  ;;  %v747_v9 = vpack.c.bf16 (!%p175_p3), %v276_v6, %v274_v5  ;;  %v273_v10 = vld [vmem:[%s1110_s2 + $0x20] sm:$0xff] (!%p175_p3)  ;;  %v275_v11 = vld [vmem:[%s1110_s2 + $0x30] sm:$0xff] (!%p175_p3)  ;;  %v278_v12 = vld [vmem:[%s1110_s2 + $0x48] sm:$0xff] (!%p175_p3) }
   0x9   : > { %744 = vmatprep.subr.bf16.mxu0 (!%p175_p3), %v743_v3  ;;  %v280_v13 = vld [vmem:[%s1110_s2 + $0x58] sm:$0xff] (!%p175_p3)  ;;  %755 = vmatprep.subr.bf16.mxu1 (!%p175_p3), %v743_v3  ;;  %v749_v14 = vpack.c.bf16 (!%p175_p3), %v275_v11, %v273_v10  ;;  %v277_v16 = vld [vmem:[%s1110_s2 + $0x40] sm:$0xff] (!%p175_p3)  ;;  %v279_v17 = vld [vmem:[%s1110_s2 + $0x50] sm:$0xff] (!%p175_p3) }
   0xa   : > { %746 = vmatpush1.bf16.msra.mxu0 (!%p175_p3), %v745_v8  ;;  %759 = vmatpush1.bf16.msra.mxu1 (!%p175_p3), %v745_v8  ;;  %v751_v15 = vpack.c.bf16 (!%p175_p3), %v280_v13, %v278_v12  ;;  %v753_v19 = vpack.c.bf16 (!%p175_p3), %v279_v17, %v277_v16  ;;  %v282_v21 = vld [vmem:[%s1110_s2 + $0x68] sm:$0x1] (!%p175_p3)  ;;  %v281_v23 = vld [vmem:[%s1110_s2 + $0x60] sm:$0x1] (!%p175_p3) }
   0xb   : > { %748 = vmatprep.subr.bf16.mxu0 (!%p175_p3), %v747_v9  ;;  %756 = vmatprep.subr.bf16.mxu1 (!%p175_p3), %v747_v9 }
   0xe   : > { %s1117_s12 = smov (!%p217_p4, %s867_s12), 1  ;;  %750 = vmatpush1.bf16.msra.mxu0 %v749_v14  ;;  %760 = vmatpush1.bf16.msra.mxu1 %v749_v14 }
   0xf   : > { %s763_s9 = smul.u32 56, %s1117_s12  ;;  %752 = vmatprep.subr.bf16.mxu0 %v751_v15  ;;  %757 = vmatprep.subr.bf16.mxu1 %v751_v15  ;;  %s741_s25 = sshll.u32 %s1117_s12, 7 }
  0x10   : > { %s986_s28 = scalar_lea.vmem %s1108_s0, %s741_s25  ;;  %s1055_s4 = scalar_lea.vmem %s1111_s3, %s741_s25 }
  0x11   : > { %s234_s20 = scalar_lea.vmem %s1109_s1, %s763_s9  ;;  %v989_v36 = vld [vmem:[%s986_s28] sm:$0xff]  ;;  %v992_v37 = vld [vmem:[%s986_s28 + $0x8] sm:$0xff]  ;;  %v997_v42 = vld [vmem:[%s986_s28 + $0x10] sm:$0xff] }
  0x12   : > { %v262_v18 = vld [vmem:[%s234_s20] sm:$0xff]  ;;  %v263_v20 = vld [vmem:[%s234_s20 + $0x8] sm:$0xff]  ;;  %754 = vmatpush1.bf16.msra.mxu0 %v753_v19  ;;  %v264_v22 = vld [vmem:[%s234_s20 + $0x10] sm:$0xff]  ;;  %761 = vmatpush1.bf16.msra.mxu1 %v753_v19 }
  0x13   : > { %283 = vxpose.xlu0.b32.start [1/7] (short) (narrow) %v262_v18, 64  ;;  %713 = vmatprep.subr.msk.mxu0 %vm340_vm0, %v282_v21  ;;  %v265_v24 = vld [vmem:[%s234_s20 + $0x18] sm:$0xff]  ;;  %v266_v25 = vld [vmem:[%s234_s20 + $0x20] sm:$0xff]  ;;  %v267_v26 = vld [vmem:[%s234_s20 + $0x28] sm:$0xff] }
  0x14   : > { %758 = vmatprep.subr.msk.mxu1 %vm340_vm0, %v282_v21  ;;  %v268_v27 = vld [vmem:[%s234_s20 + $0x30] sm:$0x1]  ;;  %v1000_v44 = vld [vmem:[%s986_s28 + $0x18] sm:$0xff]  ;;  %v1005_v50 = vld [vmem:[%s986_s28 + $0x20] sm:$0xff] }
  0x15   : > { %v1008_v52 = vld [vmem:[%s986_s28 + $0x28] sm:$0xff]  ;;  %v1013_v58 = vld [vmem:[%s986_s28 + $0x30] sm:$0xff]  ;;  %v1016_v60 = vld [vmem:[%s986_s28 + $0x38] sm:$0xff] }
  0x16   : > { %714 = vmatpush1.msk.msra.mxu0 %vm340_vm0, %v281_v23  ;;  %762 = vmatpush1.msk.msra.mxu1 %vm340_vm0, %v281_v23  ;;  %v1021_v2 = vld [vmem:[%s986_s28 + $0x40] sm:$0xff]  ;;  %v1024_v5 = vld [vmem:[%s986_s28 + $0x48] sm:$0xff]  ;;  %v1029_v14 = vld [vmem:[%s986_s28 + $0x50] sm:$0xff] }
  0x17   : > { %284 = vxpose.xlu0.b32.cont [2/7] (short) (narrow) %v263_v20, 64  ;;  %v1032_v17 = vld [vmem:[%s986_s28 + $0x58] sm:$0xff] }
  0x1b   : > { %285 = vxpose.xlu0.b32.cont [3/7] (short) (narrow) %v264_v22, 64 }
  0x1f   : > { %286 = vxpose.xlu0.b32.cont [4/7] (short) (narrow) %v265_v24, 64 }
  0x23   : > { %287 = vxpose.xlu0.b32.cont [5/7] (short) (narrow) %v266_v25, 64 }
  0x27   : > { %288 = vxpose.xlu0.b32.cont [6/7] (short) (narrow) %v267_v26, 64  ;;  %v1037_v26 = vld [vmem:[%s986_s28 + $0x60] sm:$0xff] }
  0x2b   : > { %289 = vxpose.xlu0.b32.end [7/7] (short) (narrow) %v268_v27, 64 }
  0x93   : > { %v299_v28 = vpop.trf.xlu0 }
  0x94   : > { %715 = vmatmul.mubr.msk.f32.vlgmr.msra.gmra.mrb[0].mxu0 %vm315_vm1, %v299_v28 }
  0x95   : > { %417 = vmatprep.mubr.f32.mxu0 %v877_v7 }
  0x97   : > { %v300_v29 = vpop.trf.xlu0 }
  0x98   : > { %716 = vmatmul.mubr.msk.f32.gmra.mrb[2].mxu0 %vm315_vm1, %v300_v29  ;;  %v1040_v29 = vld [vmem:[%s986_s28 + $0x68] sm:$0xff] }
  0x99   : > { %423 = vmatprep.mubr.f32.mxu0 %v877_v7 }
  0x9b   : > { %v301_v30 = vpop.trf.xlu0 }
  0x9c   : > { %717 = vmatmul.mubr.msk.f32.gmra.mrb[4].mxu0 %vm315_vm1, %v301_v30 }
  0x9d   : > { %429 = vmatprep.mubr.f32.mxu0 %v877_v7 }
  0x9f   : > { %v302_v31 = vpop.trf.xlu0 }
  0xa0   : > { %718 = vmatmul.mubr.msk.f32.gmra.mrb[6].mxu0 %vm315_vm1, %v302_v31 }
  0xa3   : > { %v303_v32 = vpop.trf.xlu0 }
  0xa4   : > { %719 = vmatmul.mubr.msk.f32.vlgmr.msra.gmra.mrb[0].mxu1 %vm315_vm1, %v303_v32 }
  0xa5   : > { %441 = vmatprep.mubr.f32.mxu1 %v877_v7 }
  0xa7   : > { %v304_v33 = vpop.trf.xlu0 }
  0xa8   : > { %720 = vmatmul.mubr.msk.f32.gmra.mrb[2].mxu1 %vm315_vm1, %v304_v33 }
  0xa9   : > { %447 = vmatprep.mubr.f32.mxu1 %v877_v7 }
  0xab   : > { %v305_v34 = vpop.trf.xlu0 }
  0xac   : > { %721 = vmatmul.mubr.msk.f32.gmra.mrb[4].mxu1 %vm315_vm1, %v305_v34 }
  0xad   : > { %453 = vmatprep.mubr.f32.mxu1 %v877_v7 }
  0xaf   : > { %v306_v35 = vpop.trf.xlu0 }
  0xb0   : > { %722 = vmatmul.mubr.msk.f32.gmra.mrb[6].mxu1 %vm315_vm1, %v306_v35 }
 0x167   : > { %v413_v38 = vpop.f32.mrb[0].mxu0 }
 0x168   : > { %v414_v39 = vadd.f32 %v413_v38, %v989_v36  ;;  %v415_v40 = vpop.f32.mrb[1].mxu0 }
 0x169   : > { %v416_v41 = vadd.f32 %v415_v40, %v992_v37  ;;  %v1045_v40 = vld [vmem:[%s986_s28 + $0x70] sm:$0xff] }
 0x16a   : > { %v723_v43 = vmul.f32 -1.442695, %v414_v39 }
 0x16b   : > { %v724_v45 = vmul.f32 -1.442695, %v416_v41  ;;  %v419_v46 = vpop.f32.mrb[2].mxu0 }
 0x16c   : > { %789 = vpow2.f32 %v723_v43  ;;  %v420_v47 = vadd.f32 %v419_v46, %v997_v42  ;;  %v421_v48 = vpop.f32.mrb[3].mxu0 }
 0x16d   : > { %791 = vpow2.f32 %v724_v45  ;;  %v422_v49 = vadd.f32 %v421_v48, %v1000_v44  ;;  %v1048_v45 = vld [vmem:[%s986_s28 + $0x78] sm:$0xff] }
 0x16e   : > { %v725_v51 = vmul.f32 -1.442695, %v420_v47 }
 0x16f   : > { %v726_v53 = vmul.f32 -1.442695, %v422_v49  ;;  %v425_v54 = vpop.f32.mrb[4].mxu0 }
 0x170   : > { %793 = vpow2.f32 %v725_v51  ;;  %v426_v55 = vadd.f32 %v425_v54, %v1005_v50  ;;  %v427_v56 = vpop.f32.mrb[5].mxu0 }
 0x171   : > { %795 = vpow2.f32 %v726_v53  ;;  %v428_v57 = vadd.f32 %v427_v56, %v1008_v52 }
 0x172   : > { %v727_v59 = vmul.f32 -1.442695, %v426_v55 }
 0x173   : > { %v728_v61 = vmul.f32 -1.442695, %v428_v57  ;;  %v431_v62 = vpop.f32.mrb[6].mxu0 }
 0x174   : > { %797 = vpow2.f32 %v727_v59  ;;  %v432_v63 = vadd.f32 %v431_v62, %v1013_v58  ;;  %v433_v0 = vpop.f32.mrb[7].mxu0 }
 0x175   : > { %799 = vpow2.f32 %v728_v61  ;;  %v434_v1 = vadd.f32 %v433_v0, %v1016_v60 }
 0x176   : > { %v790_v3 = vpop.eup %789  ;;  %v729_v4 = vmul.f32 -1.442695, %v432_v63 }
 0x177   : > { %v792_v6 = vpop.eup %791  ;;  %v508_v7 = vadd.f32 1.0, %v790_v3  ;;  %v730_v8 = vmul.f32 -1.442695, %v434_v1  ;;  %v437_v9 = vpop.f32.mrb[0].mxu1 }
 0x178   : > { %v509_v10 = vadd.f32 1.0, %v792_v6  ;;  %801 = vpow2.f32 %v729_v4  ;;  %v438_v11 = vadd.f32 %v437_v9, %v1021_v2  ;;  %v439_v12 = vpop.f32.mrb[1].mxu1 }
 0x179   : > { %803 = vrcp.f32 %v508_v7  ;;  %v440_v13 = vadd.f32 %v439_v12, %v1024_v5 }
 0x17a   : > { %v794_v15 = vpop.eup %793  ;;  %805 = vrcp.f32 %v509_v10  ;;  %v731_v16 = vmul.f32 -1.442695, %v438_v11 }
 0x17b   : > { %v796_v18 = vpop.eup %795  ;;  %v510_v19 = vadd.f32 1.0, %v794_v15  ;;  %807 = vpow2.f32 %v730_v8  ;;  %v732_v20 = vmul.f32 -1.442695, %v440_v13  ;;  %v443_v21 = vpop.f32.mrb[2].mxu1 }
 0x17c   : > { %v511_v22 = vadd.f32 1.0, %v796_v18  ;;  %809 = vpow2.f32 %v731_v16  ;;  %v444_v23 = vadd.f32 %v443_v21, %v1029_v14  ;;  %v445_v24 = vpop.f32.mrb[3].mxu1 }
 0x17d   : > { %811 = vrcp.f32 %v510_v19  ;;  %v446_v25 = vadd.f32 %v445_v24, %v1032_v17 }
 0x17e   : > { %v798_v27 = vpop.eup %797  ;;  %813 = vrcp.f32 %v511_v22  ;;  %v733_v28 = vmul.f32 -1.442695, %v444_v23 }
 0x17f   : > { %v800_v30 = vpop.eup %799  ;;  %v512_v31 = vadd.f32 1.0, %v798_v27  ;;  %815 = vpow2.f32 %v732_v20  ;;  %v734_v32 = vmul.f32 -1.442695, %v446_v25  ;;  %v449_v33 = vpop.f32.mrb[4].mxu1 }
 0x180   : > { %v513_v34 = vadd.f32 1.0, %v800_v30  ;;  %817 = vpow2.f32 %v733_v28  ;;  %v450_v35 = vadd.f32 %v449_v33, %v1037_v26  ;;  %v451_v38 = vpop.f32.mrb[5].mxu1 }
 0x181   : > { %819 = vrcp.f32 %v512_v31  ;;  %v452_v39 = vadd.f32 %v451_v38, %v1040_v29 }
 0x182   : > { %v802_v41 = vpop.eup %801  ;;  %821 = vrcp.f32 %v513_v34  ;;  %v735_v43 = vmul.f32 -1.442695, %v450_v35 }
 0x183   : > { %v804_v46 = vpop.eup %803  ;;  %v514_v47 = vadd.f32 1.0, %v802_v41  ;;  %823 = vpow2.f32 %v734_v32  ;;  %v736_v48 = vmul.f32 -1.442695, %v452_v39  ;;  %v455_v49 = vpop.f32.mrb[6].mxu1 }
 0x184   : > { %v806_v51 = vpop.eup %805  ;;  %v556_v53 = vmul.f32 %v804_v46, %v989_v36  ;;  %825 = vpow2.f32 %v735_v43  ;;  %v456_v54 = vadd.f32 %v455_v49, %v1045_v40  ;;  %v457_v55 = vpop.f32.mrb[7].mxu1 }
 0x185   : > { %v808_v56 = vpop.eup %807  ;;  %v557_v57 = vmul.f32 %v806_v51, %v992_v37  ;;  %827 = vrcp.f32 %v514_v47  ;;  %v458_v59 = vadd.f32 %v457_v55, %v1048_v45 }
 0x186   : > { %v810_v61 = vpop.eup %809  ;;  %572 = vst [vmem:[%s1055_s4] sm:$0xff] %v556_v53  ;;  %v515_v62 = vadd.f32 1.0, %v808_v56  ;;  %829 = vpow2.f32 %v736_v48  ;;  %v737_v63 = vmul.f32 -1.442695, %v456_v54 }
 0x187   : > { %v812_v0 = vpop.eup %811  ;;  %574 = vst.msk [vmem:[%s1055_s4 + $0x8] sm:$0xff] %vm573_vm2, %v557_v57  ;;  %v516_v36 = vadd.f32 1.0, %v810_v61  ;;  %v738_v1 = vmul.f32 -1.442695, %v458_v59 }
 0x188   : > { %v814_v3 = vpop.eup %813  ;;  %v558_v4 = vmul.f32 %v812_v0, %v997_v42  ;;  %831 = vrcp.f32 %v515_v62 }
 0x189   : > { %v816_v37 = vpop.eup %815  ;;  %v559_v6 = vmul.f32 %v814_v3, %v1000_v44  ;;  %833 = vrcp.f32 %v516_v36 }
 0x18a   : > { %v818_v7 = vpop.eup %817  ;;  %575 = vst [vmem:[%s1055_s4 + $0x10] sm:$0xff] %v558_v4  ;;  %v517_v8 = vadd.f32 1.0, %v816_v37  ;;  %835 = vpow2.f32 %v737_v63 }
 0x18b   : > { %v820_v9 = vpop.eup %819  ;;  %576 = vst.msk [vmem:[%s1055_s4 + $0x18] sm:$0xff] %vm573_vm2, %v559_v6  ;;  %v518_v10 = vadd.f32 1.0, %v818_v7  ;;  %837 = vpow2.f32 %v738_v1 }
 0x18c   : > { %v822_v11 = vpop.eup %821  ;;  %v560_v12 = vmul.f32 %v820_v9, %v1005_v50  ;;  %839 = vrcp.f32 %v517_v8 }
 0x18d   : > { %v824_v42 = vpop.eup %823  ;;  %v561_v44 = vmul.f32 %v822_v11, %v1008_v52  ;;  %841 = vrcp.f32 %v518_v10 }
 0x18e   : > { %v826_v13 = vpop.eup %825  ;;  %577 = vst [vmem:[%s1055_s4 + $0x20] sm:$0xff] %v560_v12  ;;  %v519_v15 = vadd.f32 1.0, %v824_v42 }
 0x18f   : > { %v828_v16 = vpop.eup %827  ;;  %578 = vst.msk [vmem:[%s1055_s4 + $0x28] sm:$0xff] %vm573_vm2, %v561_v44  ;;  %v520_v18 = vadd.f32 1.0, %v826_v13 }
 0x190   : > { %v830_v19 = vpop.eup %829  ;;  %v562_v20 = vmul.f32 %v828_v16, %v1013_v58  ;;  %843 = vrcp.f32 %v519_v15 }
 0x191   : > { %845 = vrcp.f32 %v520_v18  ;;  %v521_v50 = vadd.f32 1.0, %v830_v19 }
 0x192   : > { %v832_v21 = vpop.eup %831  ;;  %579 = vst [vmem:[%s1055_s4 + $0x30] sm:$0xff] %v562_v20 }
 0x193   : > { %v834_v22 = vpop.eup %833  ;;  %v563_v52 = vmul.f32 %v832_v21, %v1016_v60  ;;  %847 = vrcp.f32 %v521_v50 }
 0x194   : > { %v836_v23 = vpop.eup %835  ;;  %v564_v24 = vmul.f32 %v834_v22, %v1021_v2 }
 0x195   : > { %v838_v25 = vpop.eup %837  ;;  %580 = vst.msk [vmem:[%s1055_s4 + $0x38] sm:$0xff] %vm573_vm2, %v563_v52  ;;  %v522_v27 = vadd.f32 1.0, %v836_v23 }
 0x196   : > { %v840_v58 = vpop.eup %839  ;;  %581 = vst [vmem:[%s1055_s4 + $0x40] sm:$0xff] %v564_v24  ;;  %v523_v28 = vadd.f32 1.0, %v838_v25 }
 0x197   : > { %v842_v30 = vpop.eup %841  ;;  %v565_v31 = vmul.f32 %v840_v58, %v1024_v5  ;;  %849 = vrcp.f32 %v522_v27 }
 0x198   : > { %v566_v60 = vmul.f32 %v842_v30, %v1029_v14  ;;  %851 = vrcp.f32 %v523_v28 }
 0x199   : > { %582 = vst.msk [vmem:[%s1055_s4 + $0x48] sm:$0xff] %vm573_vm2, %v565_v31 }
 0x19a   : > { %v844_v2 = vpop.eup %843  ;;  %583 = vst [vmem:[%s1055_s4 + $0x50] sm:$0xff] %v566_v60 }
 0x19b   : > { %v846_v32 = vpop.eup %845  ;;  %v567_v33 = vmul.f32 %v844_v2, %v1032_v17 }
 0x19c   : > { %v568_v34 = vmul.f32 %v846_v32, %v1037_v26 }
 0x19d   : > { %v848_v35 = vpop.eup %847  ;;  %584 = vst.msk [vmem:[%s1055_s4 + $0x58] sm:$0xff] %vm573_vm2, %v567_v33 }
 0x19e   : > { %585 = vst [vmem:[%s1055_s4 + $0x60] sm:$0xff] %v568_v34  ;;  %v569_v5 = vmul.f32 %v848_v35, %v1040_v29 }
 0x1a0   : > { %586 = vst.msk [vmem:[%s1055_s4 + $0x68] sm:$0xff] %vm573_vm2, %v569_v5 }
 0x1a1   : > { %v850_v14 = vpop.eup %849 }
 0x1a2   : > { %v852_v38 = vpop.eup %851  ;;  %v570_v39 = vmul.f32 %v850_v14, %v1045_v40 }
 0x1a3   : > { %v571_v41 = vmul.f32 %v852_v38, %v1048_v45 }
 0x1a4   : > { %587 = vst [vmem:[%s1055_s4 + $0x70] sm:$0xff] %v570_v39 }
 0x1a5   : > { %588 = vst.msk [vmem:[%s1055_s4 + $0x78] sm:$0xff] %vm573_vm2, %v571_v41 }
 0x1a6 PF: > { %s13_s14 = sadd.s32 1, %s875_s14   ;;  %s1112_s12 = smov %s871_s13 }
 0x1a7   : > { %p10_p5 = scmp.ge.s32.totalorder %s13_s14, 4   ;;  %s1113_s13 = smov %s1115_s15 }
 0x1a9   :  { %12 = sbr.rel (!%p10_p5) target bundleno = 2 (0x2), region = 65 }

// kernel: silutopsis_forward.4
= control target key start
LH: loop header
LB: loop body
LE: loop exit
PB: predicated region body
PF: predicated region fallthrough
CT: control target
= control target key end

     0   :  { %s2006_s12 = smov 0   ;;  %s2542_s0 = inlined_call_operand.vmem [shape: f32[2,49,64], index: 0, kind: input, shape index: {}]   ;;  %s2543_s1 = inlined_call_operand.vmem [shape: f32[8,64], index: 1, kind: input, shape index: {}]   ;;  %s2544_s2 = inlined_call_operand.vmem [shape: bf16[64,64], index: 2, kind: input, shape index: {}]   ;;  %s2545_s3 = inlined_call_operand.vmem [shape: f32[2,49,64], index: 3, kind: output, shape index: {}]  }
   0x1 LB: > { %s1481_s13 = sadd.s32 4294967295, %s1979_s12   ;;  %p1485_p0 = scmp.ge.s32.totalorder %s1979_s12, 1  ;;  %s1979_s12 = sphi %s2006_s12, %s13_s12  }
   0x2   : > { %p137_p1 = scmp.lt.s32.totalorder %s1979_s12, 3 }
   0x4   : > { %p138_p2 = pnand %p1485_p0, %p137_p1 }
   0x5   : > { %p161_p3 = scmp.lt.s32.totalorder (!%p138_p2), %s1481_s13, 1  ;;  %vm180_vm0 = vcmask (!%p138_p2), 523264   ;;  %vm199_vm1 = vcmask (!%p138_p2), 516096   ;;  %v1981_v49 = vmov (!%p138_p2), 0.0|0.0   ;;  %vm1982_vm2 = vmmov (!%p138_p2), 0   ;;  %s1984_s20 = smov (!%p138_p2), 96  }
   0x6   : > { %141 = sbr.rel (%p138_p2) target bundleno = 2444 (0x98c), region = 32  ;;  %1794 = vmatprep.subr.bf16.mxu0 (!%p138_p2), %v1981_v49  ;;  %1806 = vmatprep.subr.bf16.mxu1 (!%p138_p2), %v1981_v49  ;;  %v1983_v50 = vmov (!%p138_p2), 0.0   ;;  %v274_v56 = vlaneseq (!%p138_p2)  ;;  %vm347_vm3 = vcmask (!%p138_p2), 261120   ;;  %vm590_vm5 = vcmask (!%p138_p2), 1040384   ;;  %s1985_s27 = smov (!%p138_p2), 32  }
   0x7   : > { %1652 = vmatprep.mubr.msk.f32.mxu0 (!%p138_p2), %vm1982_vm2, %v1983_v50  ;;  %1687 = vmatprep.mubr.msk.f32.mxu1 (!%p138_p2), %vm1982_vm2, %v1983_v50  ;;  %vm2123_vm4 = vmpackc.low (!%p138_p2), %vm347_vm3, %vm347_vm3  ;;  %vm490_vm6 = vcmask (!%p138_p2), 400384   ;;  %vm509_vm7 = vcmask (!%p138_p2), 393216   ;;  %vm723_vm8 = vcmask (!%p138_p2), 257024   ;;  %vm730_vm9 = vcmask (!%p138_p2), 253952  }
   0x8   : > { %v2070_v63 = vshrl.u32 (!%p138_p2), %v274_v56, 7  ;;  %vm731_vm10 = vsmask.f32 (!%p138_p2), 256  ;;  %vm1161_vm12 = vcmask (!%p138_p2), 519424   ;;  %vm1168_vm13 = vcmask (!%p138_p2), 516352  }
   0x9   : > { %vm732_vm11 = vmand (!%p138_p2), %vm730_vm9, %vm731_vm10 }
   0xa   : > { %vm1169_vm14 = vmand (!%p138_p2), %vm1168_vm13, %vm731_vm10 }
   0xd   : > { %s2549_s13 = smov (!%p161_p3, %s1481_s13), 1 }
   0xe   : > { %s1836_s14 = smul.u32 56, %s2549_s13 }
  0x10   : > { %s165_s17 = scalar_lea.vmem %s2542_s0, %s1836_s14  ;;  %s2517_s7 = scalar_lea.vmem %s2545_s3, %s1836_s14 }
  0x11   : > { %v172_v0 = vld [vmem:[%s165_s17] sm:$0xff]  ;;  %v174_v1 = vld [vmem:[%s165_s17 + $0x10] sm:$0xff]  ;;  %v173_v2 = vld [vmem:[%s165_s17 + $0x8] sm:$0xff] }
  0x12   : > { %v181_v3 = vsel %vm180_vm0, %v172_v0, 0.0  ;;  %v187_v4 = vsel %vm180_vm0, %v174_v1, 0.0  ;;  %v175_v5 = vld [vmem:[%s165_s17 + $0x18] sm:$0xff]  ;;  %v184_v6 = vsel %vm180_vm0, %v173_v2, 0.0  ;;  %v176_v8 = vld [vmem:[%s165_s17 + $0x20] sm:$0xff]  ;;  %v177_v9 = vld [vmem:[%s165_s17 + $0x28] sm:$0xff] }
  0x13   : > { %182 = vadd.xlane.f32.xlu0 %v181_v3  ;;  %188 = vadd.xlane.f32.xlu1 %v187_v4  ;;  %v190_v7 = vsel %vm180_vm0, %v175_v5, 0.0  ;;  %v193_v10 = vsel %vm180_vm0, %v176_v8, 0.0  ;;  %v196_v11 = vsel %vm180_vm0, %v177_v9, 0.0  ;;  %v178_v12 = vld [vmem:[%s165_s17 + $0x30] sm:$0x1] }
  0x14   : > { %v200_v13 = vsel %vm199_vm1, %v178_v12, 0.0 }
  0x17   : > { %185 = vadd.xlane.f32.xlu0 %v184_v6  ;;  %191 = vadd.xlane.f32.xlu1 %v190_v7  ;;  %v305_v6 = vsub.s32 2, %v2070_v63  ;;  %v327_v7 = vsub.s32 4, %v2070_v63 }
  0x1b   : > { %194 = vadd.xlane.f32.xlu0 %v193_v10  ;;  %197 = vadd.xlane.f32.xlu1 %v196_v11  ;;  %v2077_v10 = vld [vmem:[%s2543_s1] sm:$0xff] }
  0x1f   : > { %201 = vadd.xlane.f32.xlu0 %v200_v13 }
  0xa0   : > { %v183_v14 = vpop.xlane.xlu0 %182  ;;  %v189_v15 = vpop.xlane.xlu1 %188 }
  0xa1   : > { %v204_v16 = vmul.f32 0.015625, %v183_v14  ;;  %v206_v17 = vmul.f32 0.015625, %v189_v15  ;;  %v316_v14 = vsub.s32 3, %v2070_v63 }
  0xa3   : > { %v2029_v18 = vsub.f32 %v172_v0, %v204_v16  ;;  %v2031_v19 = vsub.f32 %v174_v1, %v206_v17  ;;  %v2084_v16 = vrot.slane %v2077_v10, %v305_v6  ;;  %v328_v17 = vrot.slane %v2077_v10, %v327_v7 }
  0xa4   : > { %v186_v20 = vpop.xlane.xlu0 %185  ;;  %v192_v21 = vpop.xlane.xlu1 %191 }
  0xa5   : > { %v205_v22 = vmul.f32 0.015625, %v186_v20  ;;  %v207_v23 = vmul.f32 0.015625, %v192_v21  ;;  %v218_v24 = vmul.f32 %v2029_v18, %v2029_v18  ;;  %v220_v25 = vmul.f32 %v2031_v19, %v2031_v19 }
  0xa6   : > { %v338_v20 = vsub.s32 5, %v2070_v63 }
  0xa7   : > { %v2037_v26 = vsub.f32 %v173_v2, %v205_v22  ;;  %v2039_v27 = vsub.f32 %v175_v5, %v207_v23  ;;  %v225_v28 = vsel %vm180_vm0, %v218_v24, 0.0  ;;  %v231_v31 = vsel %vm180_vm0, %v220_v25, 0.0 }
  0xa8   : > { %226 = vadd.xlane.f32.xlu1 %v225_v28  ;;  %v195_v29 = vpop.xlane.xlu0 %194  ;;  %v198_v30 = vpop.xlane.xlu1 %197  ;;  %v2089_v22 = vrot.slane %v2077_v10, %v316_v14  ;;  %v339_v25 = vrot.slane %v2077_v10, %v338_v20 }
  0xa9   : > { %v208_v32 = vmul.f32 0.015625, %v195_v29  ;;  %v209_v33 = vmul.f32 0.015625, %v198_v30  ;;  %v219_v34 = vmul.f32 %v2037_v26, %v2037_v26  ;;  %v221_v35 = vmul.f32 %v2039_v27, %v2039_v27 }
  0xab   : > { %v2047_v36 = vsub.f32 %v176_v8, %v208_v32  ;;  %v2049_v37 = vsub.f32 %v177_v9, %v209_v33  ;;  %v228_v38 = vsel %vm180_vm0, %v219_v34, 0.0  ;;  %v234_v41 = vsel %vm180_vm0, %v221_v35, 0.0 }
  0xac   : > { %232 = vadd.xlane.f32.xlu1 %v231_v31  ;;  %229 = vadd.xlane.f32.xlu0 %v228_v38  ;;  %v202_v39 = vpop.xlane.xlu0 %201 }
  0xad   : > { %v210_v40 = vmul.f32 0.015625, %v202_v39  ;;  %v222_v42 = vmul.f32 %v2047_v36, %v2047_v36  ;;  %v223_v43 = vmul.f32 %v2049_v37, %v2049_v37 }
  0xaf   : > { %v2057_v44 = vsub.f32 %v178_v12, %v210_v40  ;;  %v237_v45 = vsel %vm180_vm0, %v222_v42, 0.0  ;;  %v240_v46 = vsel %vm180_vm0, %v223_v43, 0.0 }
  0xb0   : > { %235 = vadd.xlane.f32.xlu0 %v234_v41  ;;  %238 = vadd.xlane.f32.xlu1 %v237_v45 }
  0xb1   : > { %v224_v47 = vmul.f32 %v2057_v44, %v2057_v44 }
  0xb3   : > { %v243_v48 = vsel %vm199_vm1, %v224_v47, 0.0 }
  0xb4   : > { %241 = vadd.xlane.f32.xlu0 %v240_v46  ;;  %244 = vadd.xlane.f32.xlu1 %v243_v48 }
 0x135   : > { %v227_v51 = vpop.xlane.xlu1 %226 }
 0x136   : > { %v246_v52 = vmul.f32 0.015625, %v227_v51 }
 0x138   : > { %v253_v53 = vadd.f32 1e-06, %v246_v52 }
 0x139   : > { %v233_v54 = vpop.xlane.xlu1 %232  ;;  %v230_v55 = vpop.xlane.xlu0 %229 }
 0x13a   : > { %1888 = vrsqrt.f32 %v253_v53  ;;  %v248_v57 = vmul.f32 0.015625, %v233_v54  ;;  %v247_v58 = vmul.f32 0.015625, %v230_v55 }
 0x13c   : > { %v255_v59 = vadd.f32 1e-06, %v248_v57  ;;  %v254_v60 = vadd.f32 1e-06, %v247_v58 }
 0x13d   : > { %v239_v61 = vpop.xlane.xlu1 %238  ;;  %v236_v62 = vpop.xlane.xlu0 %235 }
 0x13e   : > { %1890 = vrsqrt.f32 %v255_v59  ;;  %v250_v0 = vmul.f32 0.015625, %v239_v61  ;;  %v249_v1 = vmul.f32 0.015625, %v236_v62 }
 0x13f   : > { %1892 = vrsqrt.f32 %v254_v60 }
 0x140   : > { %v257_v2 = vadd.f32 1e-06, %v250_v0  ;;  %v256_v3 = vadd.f32 1e-06, %v249_v1 }
 0x141   : > { %v245_v4 = vpop.xlane.xlu1 %244  ;;  %v242_v5 = vpop.xlane.xlu0 %241 }
 0x142   : > { %1894 = vrsqrt.f32 %v257_v2  ;;  %v252_v8 = vmul.f32 0.015625, %v245_v4  ;;  %v251_v9 = vmul.f32 0.015625, %v242_v5 }
 0x143   : > { %1896 = vrsqrt.f32 %v256_v3 }
 0x144   : > { %v1889_v11 = vpop.eup %1888  ;;  %v259_v12 = vadd.f32 1e-06, %v252_v8  ;;  %v258_v13 = vadd.f32 1e-06, %v251_v9  ;;  %v276_v9 = vsub.s32 0, %v2070_v63 }
 0x145   : > { %v2081_v15 = vmul.f32 %v1889_v11, %v2029_v18 }
 0x146   : > { %1898 = vrsqrt.f32 %v259_v12  ;;  %v277_v12 = vrot.slane %v2077_v10, %v276_v9 }
 0x147   : > { %1900 = vrsqrt.f32 %v258_v13  ;;  %v307_v24 = vmul.f32 %v2084_v16, %v2081_v15  ;;  %v329_v18 = vmul.f32 %v328_v17, %v2081_v15  ;;  %v287_v13 = vsub.s32 1, %v2070_v63 }
 0x148   : > { %v1891_v21 = vpop.eup %1890 }
 0x149   : > { %v1893_v23 = vpop.eup %1892  ;;  %v2096_v28 = vmul.f32 %v1891_v21, %v2031_v19  ;;  %v2105_v34 = vadd.f32 %v2089_v22, %v307_v24  ;;  %v2107_v35 = vadd.f32 %v339_v25, %v329_v18  ;;  %v288_v20 = vrot.slane %v2077_v10, %v287_v13 }
 0x14a   : > { %v2099_v29 = vmul.f32 %v1893_v23, %v2037_v26 }
 0x14b   : > { %v331_v38 = vmul.f32 %v328_v17, %v2096_v28  ;;  %v309_v48 = vmul.f32 %v2084_v16, %v2096_v28 }
 0x14c   : > { %v1895_v30 = vpop.eup %1894  ;;  %v308_v31 = vmul.f32 %v2084_v16, %v2099_v29  ;;  %v330_v32 = vmul.f32 %v328_v17, %v2099_v29  ;;  %v279_v24 = vmul.f32 %v277_v12, %v2099_v29 }
 0x14d   : > { %v1897_v33 = vpop.eup %1896  ;;  %v2119_v40 = vmul.f32 %v1895_v30, %v2047_v36  ;;  %v2134_v47 = vadd.f32 %v339_v25, %v331_v38  ;;  %v2162_v59 = vadd.f32 %v2089_v22, %v309_v48 }
 0x14e   : > { %v2111_v19 = vadd.f32 %v2089_v22, %v308_v31  ;;  %v2113_v26 = vadd.f32 %v339_v25, %v330_v32  ;;  %v2116_v39 = vmul.f32 %v1897_v33, %v2039_v27  ;;  %v290_v30 = vadd.f32 %v288_v20, %v279_v24 }
 0x14f   : > { %v333_v53 = vmul.f32 %v328_v17, %v2119_v40  ;;  %v311_v55 = vmul.f32 %v2084_v16, %v2119_v40  ;;  %v280_v31 = vmul.f32 %v277_v12, %v2096_v28  ;;  %v282_v29 = vmul.f32 %v277_v12, %v2119_v40 }
 0x150   : > { %v1899_v42 = vpop.eup %1898  ;;  %v1795_v43 = vpack.c.bf16 %v2111_v19, %v2105_v34  ;;  %v1807_v45 = vpack.c.bf16 %v2113_v26, %v2107_v35  ;;  %v332_v46 = vmul.f32 %v328_v17, %v2116_v39  ;;  %v310_v27 = vmul.f32 %v2084_v16, %v2116_v39 }
 0x151   : > { %v1901_v36 = vpop.eup %1900  ;;  %v2154_v56 = vmul.f32 %v1899_v42, %v2057_v44  ;;  %v2164_v60 = vadd.f32 %v339_v25, %v333_v53  ;;  %v2173_v44 = vadd.f32 %v2089_v22, %v311_v55  ;;  %v1850_v1 = vpack.i.bf16 %v2111_v19, %v2105_v34 }
 0x152   : > { %1797 = vmatpush3.bf16.xpose.msk.msra.mxu0 %vm2123_vm4, %v1795_v43  ;;  %1808 = vmatpush3.bf16.msra.mxu1 %v1807_v45  ;;  %v2140_v51 = vadd.f32 %v339_v25, %v332_v46  ;;  %v2143_v52 = vmul.f32 %v1901_v36, %v2049_v37  ;;  %v2149_v54 = vadd.f32 %v2089_v22, %v310_v27  ;;  %v2227_v10 = vmul.f32 0.17677669, %v290_v30 }
 0x153   : > { %1809 = vmatprep.subr.bf16.mxu1 %v1981_v49  ;;  %1798 = vmatprep.subr.bf16.mxu0 %v1981_v49  ;;  %v335_v4 = vmul.f32 %v328_v17, %v2154_v56  ;;  %v1865_v6 = vpack.i.bf16 %v2113_v26, %v2107_v35  ;;  %v313_v21 = vmul.f32 %v2084_v16, %v2154_v56 }
 0x154   : > { %v1810_v57 = vpack.c.bf16 %v2140_v51, %v2134_v47  ;;  %v334_v37 = vmul.f32 %v328_v17, %v2143_v52  ;;  %v312_v58 = vmul.f32 %v2084_v16, %v2143_v52  ;;  %v1855_v0 = vpack.i.bf16 %v2149_v54, %v2162_v59 }
 0x155   : > { %v1799_v2 = vpack.c.bf16 %v2149_v54, %v2162_v59  ;;  %v1870_v7 = vpack.i.bf16 %v2140_v51, %v2134_v47  ;;  %v2197_v11 = vadd.f32 %v339_v25, %v335_v4  ;;  %v278_v17 = vmul.f32 %v277_v12, %v2081_v15 }
 0x156   : > { %1811 = vmatpush3.bf16.msra.mxu1 %v1810_v57  ;;  %v2166_v61 = vadd.f32 %v339_v25, %v334_v37  ;;  %v2169_v62 = vadd.f32 %v2089_v22, %v312_v58  ;;  %v2215_v18 = vadd.f32 %v2089_v22, %v313_v21  ;;  %v291_v15 = vadd.f32 %v288_v20, %v280_v31 }
 0x157   : > { %1812 = vmatprep.subr.bf16.mxu1 %v1981_v49  ;;  %v289_v23 = vadd.f32 %v288_v20, %v278_v17  ;;  %v281_v16 = vmul.f32 %v277_v12, %v2116_v39  ;;  %v293_v33 = vadd.f32 %v288_v20, %v282_v29  ;;  %v283_v38 = vmul.f32 %v277_v12, %v2143_v52 }
 0x158   : > { %v1813_v3 = vpack.c.bf16 %v2166_v61, %v2164_v60  ;;  %v1860_v5 = vpack.i.bf16 %v2169_v62, %v2173_v44  ;;  %v1875_v8 = vpack.i.bf16 %v2166_v61, %v2164_v60  ;;  %v1803_v14 = vpack.c.bf16 %v2169_v62, %v2173_v44 }
 0x159   : > { %v2219_v25 = vmul.f32 0.17677669, %v289_v23  ;;  %v2234_v22 = vmul.f32 0.17677669, %v291_v15  ;;  %v292_v28 = vadd.f32 %v288_v20, %v281_v16  ;;  %v2248_v39 = vmul.f32 0.17677669, %v293_v33 }
 0x15a   : > { %1801 = vmatpush3.bf16.xpose.msk.msra.mxu0 %vm2123_vm4, %v1799_v2  ;;  %1814 = vmatpush3.bf16.msra.mxu1 %v1813_v3  ;;  %v294_v40 = vadd.f32 %v288_v20, %v283_v38  ;;  %v284_v42 = vmul.f32 %v277_v12, %v2154_v56 }
 0x15b   : > { %1685 = vmatprep.subr.mxu1 %v1983_v50  ;;  %1802 = vmatprep.subr.bf16.mxu0 %v1981_v49  ;;  %v2241_v32 = vmul.f32 0.17677669, %v292_v28 }
 0x15c   : > { %v2255_v43 = vmul.f32 0.17677669, %v294_v40  ;;  %v295_v45 = vadd.f32 %v288_v20, %v284_v42 }
 0x15e   : > { %1686 = vmatpush3.msk.msra.mxu1 %vm590_vm5, %v2197_v11  ;;  %v2261_v46 = vmul.f32 0.17677669, %v295_v45 }
 0x15f   : > { %1815 = vmatprep.subr.bf16.mxu1 %v1981_v49 }
 0x162   : > { %1805 = vmatpush3.bf16.xpose.msk.msra.mxu0 %vm2123_vm4, %v1803_v14 }
 0x163   : > { %1650 = vmatprep.subr.mxu0 %v1983_v50 }
 0x16a   : > { %1651 = vmatpush3.xpose.msk.msra.mxu0 %vm347_vm3, %v2215_v18 }
 0x16b   : > { %1827 = vmatprep.subr.bf16.mxu0 %v1981_v49 }
 0x16d   : > { %1653 = vmatmul.mubr.msk.f32.vlgmr.msra.gmra.mrb[0].mxu0 %vm347_vm3, %v2219_v25 }
 0x16e   : > { %1655 = vmatprep.mubr.msk.f32.mxu0 %vm1982_vm2, %v1983_v50 }
 0x171   : > { %1656 = vmatmul.mubr.msk.f32.gmra.mrb[2].mxu0 %vm347_vm3, %v2227_v10 }
 0x172   : > { %1658 = vmatprep.mubr.msk.f32.mxu0 %vm1982_vm2, %v1983_v50 }
 0x175   : > { %1659 = vmatmul.mubr.msk.f32.gmra.mrb[4].mxu0 %vm347_vm3, %v2234_v22 }
 0x176   : > { %1661 = vmatprep.mubr.msk.f32.mxu0 %vm1982_vm2, %v1983_v50 }
 0x179   : > { %1662 = vmatmul.mubr.msk.f32.gmra.mrb[6].mxu0 %vm347_vm3, %v2241_v32 }
 0x17a   : > { %1664 = vmatprep.mubr.msk.f32.mxu0 %vm1982_vm2, %v1983_v50 }
 0x17d   : > { %1665 = vmatmul.mubr.msk.f32.gmra.mrb[8].mxu0 %vm347_vm3, %v2248_v39 }
 0x17e   : > { %1667 = vmatprep.mubr.msk.f32.mxu0 %vm1982_vm2, %v1983_v50 }
 0x181   : > { %1668 = vmatmul.mubr.msk.f32.gmra.mrb[10].mxu0 %vm347_vm3, %v2255_v43 }
 0x182   : > { %1670 = vmatprep.mubr.msk.f32.mxu0 %vm1982_vm2, %v1983_v50 }
 0x185   : > { %1671 = vmatmul.mubr.msk.f32.gmra.mrb[12].mxu0 %vm347_vm3, %v2261_v46 }
 0x186   : > { %1757 = vmatprep.mubr.msk.f32.mxu0 %vm1982_vm2, %v1983_v50 }
 0x240   : > { %v456_v27 = vpop.f32.mrb[0].mxu0 }
 0x241   : > { %v1654_v36 = vpop.f32.mrb[1].mxu0  ;;  %v491_v48 = vsel %vm490_vm6, %v456_v27, -inf }
 0x242   : > { %492 = vmax.xlane.f32.xlu0 %v491_v48 }
 0x244   : > { %v461_v52 = vpop.f32.mrb[2].mxu0 }
 0x245   : > { %v1657_v53 = vpop.f32.mrb[3].mxu0  ;;  %v494_v55 = vsel %vm490_vm6, %v461_v52, -inf }
 0x246   : > { %495 = vmax.xlane.f32.xlu1 %v494_v55 }
 0x248   : > { %v466_v56 = vpop.f32.mrb[4].mxu0 }
 0x249   : > { %v1660_v57 = vpop.f32.mrb[5].mxu0  ;;  %v497_v37 = vsel %vm490_vm6, %v466_v56, -inf }
 0x24a   : > { %498 = vmax.xlane.f32.xlu0 %v497_v37 }
 0x24c   : > { %v471_v58 = vpop.f32.mrb[6].mxu0 }
 0x24d   : > { %v1663_v2 = vpop.f32.mrb[7].mxu0  ;;  %v500_v3 = vsel %vm490_vm6, %v471_v58, -inf }
 0x24e   : > { %501 = vmax.xlane.f32.xlu1 %v500_v3 }
 0x250   : > { %v476_v4 = vpop.f32.mrb[8].mxu0 }
 0x251   : > { %v1666_v9 = vpop.f32.mrb[9].mxu0  ;;  %v503_v12 = vsel %vm490_vm6, %v476_v4, -inf }
 0x252   : > { %504 = vmax.xlane.f32.xlu0 %v503_v12 }
 0x254   : > { %v481_v13 = vpop.f32.mrb[10].mxu0 }
 0x255   : > { %v1669_v14 = vpop.f32.mrb[11].mxu0  ;;  %v506_v17 = vsel %vm490_vm6, %v481_v13, -inf }
 0x256   : > { %507 = vmax.xlane.f32.xlu1 %v506_v17 }
 0x258   : > { %v486_v20 = vpop.f32.mrb[12].mxu0 }
 0x259   : > { %v1672_v21 = vpop.f32.mrb[13].mxu0  ;;  %v510_v23 = vsel %vm509_vm7, %v486_v20, -inf }
 0x25a   : > { %511 = vmax.xlane.f32.xlu0 %v510_v23 }
 0x2cf   : > { %v493_v24 = vpop.xlane.xlu0 %492 }
 0x2d0   : > { %v513_v30 = vsub.f32 %v456_v27, %v493_v24 }
 0x2d2   : > { %v520_v31 = vmul.f32 1.442695, %v513_v30 }
 0x2d3   : > { %v496_v15 = vpop.xlane.xlu1 %495 }
 0x2d4   : > { %1902 = vpow2.f32 %v520_v31  ;;  %v514_v16 = vsub.f32 %v461_v52, %v496_v15 }
 0x2d6   : > { %v522_v28 = vmul.f32 1.442695, %v514_v16 }
 0x2d7   : > { %v499_v29 = vpop.xlane.xlu0 %498 }
 0x2d8   : > { %1904 = vpow2.f32 %v522_v28  ;;  %v515_v33 = vsub.f32 %v466_v56, %v499_v29 }
 0x2da   : > { %v524_v38 = vmul.f32 1.442695, %v515_v33 }
 0x2db   : > { %v502_v40 = vpop.xlane.xlu1 %501 }
 0x2dc   : > { %1906 = vpow2.f32 %v524_v38  ;;  %v516_v42 = vsub.f32 %v471_v58, %v502_v40 }
 0x2de   : > { %v1903_v45 = vpop.eup %1902  ;;  %v526_v36 = vmul.f32 1.442695, %v516_v42 }
 0x2df   : > { %v505_v48 = vpop.xlane.xlu0 %504  ;;  %v534_v53 = vsel %vm490_vm6, %v1903_v45, 0.0 }
 0x2e0   : > { %1908 = vpow2.f32 %v526_v36  ;;  %v517_v55 = vsub.f32 %v476_v4, %v505_v48  ;;  %535 = vadd.xlane.f32.xlu1 %v534_v53 }
 0x2e2   : > { %v1905_v27 = vpop.eup %1904  ;;  %v528_v57 = vmul.f32 1.442695, %v517_v55 }
 0x2e3   : > { %v508_v37 = vpop.xlane.xlu1 %507  ;;  %v537_v52 = vsel %vm490_vm6, %v1905_v27, 0.0 }
 0x2e4   : > { %1910 = vpow2.f32 %v528_v57  ;;  %v518_v2 = vsub.f32 %v481_v13, %v508_v37  ;;  %538 = vadd.xlane.f32.xlu0 %v537_v52 }
 0x2e6   : > { %v1907_v56 = vpop.eup %1906  ;;  %v530_v3 = vmul.f32 1.442695, %v518_v2 }
 0x2e7   : > { %v540_v58 = vsel %vm490_vm6, %v1907_v56, 0.0  ;;  %v512_v54 = vpop.xlane.xlu0 %511 }
 0x2e8   : > { %1912 = vpow2.f32 %v530_v3  ;;  %541 = vadd.xlane.f32.xlu1 %v540_v58  ;;  %v519_v59 = vsub.f32 %v486_v20, %v512_v54 }
 0x2ea   : > { %v1909_v9 = vpop.eup %1908  ;;  %v532_v62 = vmul.f32 1.442695, %v519_v59 }
 0x2eb   : > { %v543_v12 = vsel %vm490_vm6, %v1909_v9, 0.0 }
 0x2ec   : > { %544 = vadd.xlane.f32.xlu0 %v543_v12  ;;  %1914 = vpow2.f32 %v532_v62 }
 0x2ee   : > { %v1911_v4 = vpop.eup %1910 }
 0x2ef   : > { %v546_v14 = vsel %vm490_vm6, %v1911_v4, 0.0 }
 0x2f0   : > { %547 = vadd.xlane.f32.xlu1 %v546_v14 }
 0x2f2   : > { %v2279_v17 = vpop.eup %1912 }
 0x2f3   : > { %v549_v13 = vsel %vm490_vm6, %v2279_v17, 0.0 }
 0x2f4   : > { %550 = vadd.xlane.f32.xlu0 %v549_v13 }
 0x2f6   : > { %v2305_v44 = vpop.eup %1914 }
 0x2f7   : > { %v552_v34 = vsel %vm509_vm7, %v2305_v44, 0.0 }
 0x301   : > { %1856 = vrot.lane.b32.xlu1 %v1855_v0, %s1984_s20 }
 0x305   : > { %1861 = vrot.lane.b32.xlu1 %v1860_v5, %s1984_s20 }
 0x309   : > { %762 = vrot.lane.b32.xlu1 %v2215_v18, %s1984_s20 }
 0x30a   : > { %1851 = vrot.lane.b32.xlu0 %v1850_v1, %s1984_s20 }
 0x30e   : > { %736 = vrot.lane.b32.xlu0 %v2219_v25, %s1984_s20 }
 0x312   : > { %740 = vrot.lane.b32.xlu0 %v2234_v22, %s1984_s20 }
 0x316   : > { %744 = vrot.lane.b32.xlu0 %v2248_v39, %s1984_s20 }
 0x31a   : > { %748 = vrot.lane.b32.xlu0 %v2261_v46, %s1984_s20 }
 0x32d   : > { %553 = vadd.xlane.f32.xlu1 %v552_v34 }
 0x33e   : > { %738 = vrot.lane.b32.xlu1 %v2227_v10, %s1984_s20 }
 0x342   : > { %742 = vrot.lane.b32.xlu1 %v2241_v32, %s1984_s20 }
 0x346   : > { %746 = vrot.lane.b32.xlu1 %v2255_v43, %s1984_s20 }
 0x36d   : > { %v536_v19 = vpop.xlane.xlu1 %535 }
 0x36e   : > { %1916 = vrcp.f32 %v536_v19 }
 0x371   : > { %v539_v0 = vpop.xlane.xlu0 %538 }
 0x372   : > { %1918 = vrcp.f32 %v539_v0 }
 0x375   : > { %v542_v1 = vpop.xlane.xlu1 %541 }
 0x376   : > { %1920 = vrcp.f32 %v542_v1 }
 0x378   : > { %v1917_v5 = vpop.eup %1916 }
 0x379   : > { %v545_v18 = vpop.xlane.xlu0 %544  ;;  %v556_v25 = vmul.f32 %v1917_v5, %v1903_v45 }
 0x37a   : > { %1922 = vrcp.f32 %v545_v18 }
 0x37b   : > { %1688 = vmatmul.mubr.msk.f32.vlgmr.msra.gmra.mrb[0].mxu1 %vm490_vm6, %v556_v25 }
 0x37c   : > { %v1919_v22 = vpop.eup %1918  ;;  %1690 = vmatprep.mubr.msk.f32.mxu1 %vm1982_vm2, %v1983_v50 }
 0x37d   : > { %v548_v10 = vpop.xlane.xlu1 %547  ;;  %v558_v32 = vmul.f32 %v1919_v22, %v1905_v27 }
 0x37e   : > { %1924 = vrcp.f32 %v548_v10 }
 0x37f   : > { %1691 = vmatmul.mubr.msk.f32.gmra.mrb[2].mxu1 %vm490_vm6, %v558_v32 }
 0x380   : > { %v1921_v39 = vpop.eup %1920  ;;  %1693 = vmatprep.mubr.msk.f32.mxu1 %vm1982_vm2, %v1983_v50 }
 0x381   : > { %v551_v43 = vpop.xlane.xlu0 %550  ;;  %v560_v46 = vmul.f32 %v1921_v39, %v1907_v56  ;;  %v1857_v16 = vpop.permute.xlu1 %1856  ;;  %v733_v39 = vld [vmem:[#allocation2 + $0x18] sm:$0x1] }
 0x382   : > { %1926 = vrcp.f32 %v551_v43  ;;  %v1859_v33 = vunpack.i.h.bf16 %v1857_v16  ;;  %v1858_v38 = vunpack.i.l.bf16 %v1857_v16 }
 0x383   : > { %1694 = vmatmul.mubr.msk.f32.gmra.mrb[4].mxu1 %vm490_vm6, %v560_v46 }
 0x384   : > { %v1923_v20 = vpop.eup %1922  ;;  %1696 = vmatprep.mubr.msk.f32.mxu1 %vm1982_vm2, %v1983_v50  ;;  %v1820_v42 = vpack.c.bf16 %v1859_v33, %v1858_v38 }
 0x385   : > { %v1852_v21 = vpop.permute.xlu0 %1851  ;;  %v562_v23 = vmul.f32 %v1923_v20, %v1909_v9  ;;  %v1862_v45 = vpop.permute.xlu1 %1861 }
 0x386   : > { %v1854_v24 = vunpack.i.h.bf16 %v1852_v21  ;;  %v1853_v30 = vunpack.i.l.bf16 %v1852_v21  ;;  %v1864_v36 = vunpack.i.h.bf16 %v1862_v45  ;;  %v1863_v48 = vunpack.i.l.bf16 %v1862_v45 }
 0x387   : > { %1697 = vmatmul.mubr.msk.f32.gmra.mrb[6].mxu1 %vm490_vm6, %v562_v23 }
 0x388   : > { %v1925_v31 = vpop.eup %1924  ;;  %v1816_v15 = vpack.c.bf16 %v1854_v24, %v1853_v30  ;;  %1699 = vmatprep.mubr.msk.f32.mxu1 %vm1982_vm2, %v1983_v50  ;;  %v1824_v53 = vpack.c.bf16 %v1864_v36, %v1863_v48 }
 0x389   : > { %v564_v28 = vmul.f32 %v1925_v31, %v1911_v4  ;;  %v763_v55 = vpop.permute.xlu1 %762  ;;  %v737_v52 = vpop.permute.xlu0 %736 }
 0x38a   : > { %1818 = vmatpush3.bf16.xpose.msk.msra.mxu1 %vm2123_vm4, %v1816_v15 }
 0x38b   : > { %1700 = vmatmul.mubr.msk.f32.gmra.mrb[8].mxu1 %vm490_vm6, %v564_v28  ;;  %1819 = vmatprep.subr.bf16.mxu1 %v1981_v49 }
 0x38c   : > { %v1927_v29 = vpop.eup %1926  ;;  %1702 = vmatprep.mubr.msk.f32.mxu1 %vm1982_vm2, %v1983_v50 }
 0x38d   : > { %v566_v40 = vmul.f32 %v1927_v29, %v2279_v17  ;;  %v741_v2 = vpop.permute.xlu0 %740 }
 0x38f   : > { %1703 = vmatmul.mubr.msk.f32.gmra.mrb[10].mxu1 %vm490_vm6, %v566_v40 }
 0x390   : > { %1705 = vmatprep.mubr.msk.f32.mxu1 %vm1982_vm2, %v1983_v50 }
 0x391   : > { %v745_v3 = vpop.permute.xlu0 %744 }
 0x392   : > { %1822 = vmatpush3.bf16.xpose.msk.msra.mxu1 %vm2123_vm4, %v1820_v42 }
 0x393   : > { %1823 = vmatprep.subr.bf16.mxu1 %v1981_v49 }
 0x395   : > { %v749_v9 = vpop.permute.xlu0 %748 }
 0x39a   : > { %1826 = vmatpush3.bf16.xpose.msk.msra.mxu1 %vm2123_vm4, %v1824_v53 }
 0x39b   : > { %1720 = vmatprep.subr.mxu1 %v1983_v50 }
 0x3a2   : > { %1721 = vmatpush3.xpose.msk.msra.mxu1 %vm347_vm3, %v763_v55 }
 0x3ba   : > { %v554_v27 = vpop.xlane.xlu1 %553 }
 0x3bb   : > { %1928 = vrcp.f32 %v554_v27 }
 0x3be   : > { %v739_v41 = vpop.permute.xlu1 %738 }
 0x3c2   : > { %v743_v56 = vpop.permute.xlu1 %742 }
 0x3c5   : > { %v1929_v57 = vpop.eup %1928 }
 0x3c6   : > { %v568_v37 = vmul.f32 %v1929_v57, %v2305_v44  ;;  %v747_v58 = vpop.permute.xlu1 %746 }
 0x3c8   : > { %1706 = vmatmul.mubr.msk.f32.gmra.mrb[12].mxu1 %vm490_vm6, %v568_v37 }
 0x3c9   : > { %1722 = vmatprep.mubr.msk.f32.mxu1 %vm1982_vm2, %v1983_v50 }
 0x3cc   : > { %1723 = vmatmul.mubr.msk.f32.vlgmr.msra.gmra.mrb[14].mxu1 %vm347_vm3, %v737_v52 }
 0x3cd   : > { %1725 = vmatprep.mubr.msk.f32.mxu1 %vm1982_vm2, %v1983_v50 }
 0x3d0   : > { %1726 = vmatmul.mubr.msk.f32.gmra.mrb[16].mxu1 %vm347_vm3, %v739_v41 }
 0x3d1   : > { %1728 = vmatprep.mubr.msk.f32.mxu1 %vm1982_vm2, %v1983_v50 }
 0x3d4   : > { %1729 = vmatmul.mubr.msk.f32.gmra.mrb[18].mxu1 %vm347_vm3, %v741_v2 }
 0x3d5   : > { %1731 = vmatprep.mubr.msk.f32.mxu1 %vm1982_vm2, %v1983_v50 }
 0x3d8   : > { %1732 = vmatmul.mubr.msk.f32.gmra.mrb[20].mxu1 %vm347_vm3, %v743_v56 }
 0x3d9   : > { %1734 = vmatprep.mubr.msk.f32.mxu1 %vm1982_vm2, %v1983_v50 }
 0x3dc   : > { %1735 = vmatmul.mubr.msk.f32.gmra.mrb[22].mxu1 %vm347_vm3, %v745_v3 }
 0x3dd   : > { %1737 = vmatprep.mubr.msk.f32.mxu1 %vm1982_vm2, %v1983_v50 }
 0x3e0   : > { %1738 = vmatmul.mubr.msk.f32.gmra.mrb[24].mxu1 %vm347_vm3, %v747_v58 }
 0x3e1   : > { %1740 = vmatprep.mubr.msk.f32.mxu1 %vm1982_vm2, %v1983_v50 }
 0x3e4   : > { %1741 = vmatmul.mubr.msk.f32.gmra.mrb[26].mxu1 %vm347_vm3, %v749_v9 }
 0x44e   : > { %v660_v12 = vpop.f32.mrb[0].mxu1 }
 0x44f   : > { %v1560_v4 = vpack.c.bf16 %v660_v12, %v660_v12  ;;  %v1689_v14 = vpop.f32.mrb[1].mxu1 }
 0x451   : > { %724 = vst.msk [vmem:[#allocation2] sm:$0xf] %vm723_vm8, %v1560_v4 }
 0x452   : > { %v665_v17 = vpop.f32.mrb[2].mxu1 }
 0x453   : > { %v1561_v13 = vpack.c.bf16 %v665_v17, %v665_v17  ;;  %v1692_v54 = vpop.f32.mrb[3].mxu1 }
 0x455   : > { %725 = vst.msk [vmem:[#allocation2 + $0x4] sm:$0xf] %vm723_vm8, %v1561_v13 }
 0x456   : > { %v670_v59 = vpop.f32.mrb[4].mxu1 }
 0x457   : > { %v1562_v62 = vpack.c.bf16 %v670_v59, %v670_v59  ;;  %v1695_v44 = vpop.f32.mrb[5].mxu1 }
 0x459   : > { %726 = vst.msk [vmem:[#allocation2 + $0x8] sm:$0xf] %vm723_vm8, %v1562_v62 }
 0x45a   : > { %v675_v34 = vpop.f32.mrb[6].mxu1 }
 0x45b   : > { %v1563_v19 = vpack.c.bf16 %v675_v34, %v675_v34  ;;  %v1698_v0 = vpop.f32.mrb[7].mxu1 }
 0x45d   : > { %727 = vst.msk [vmem:[#allocation2 + $0xc] sm:$0xf] %vm723_vm8, %v1563_v19 }
 0x45e   : > { %v680_v1 = vpop.f32.mrb[8].mxu1 }
 0x45f   : > { %v1564_v5 = vpack.c.bf16 %v680_v1, %v680_v1  ;;  %v1701_v18 = vpop.f32.mrb[9].mxu1 }
 0x461   : > { %728 = vst.msk [vmem:[#allocation2 + $0x10] sm:$0xf] %vm723_vm8, %v1564_v5 }
 0x462   : > { %v685_v25 = vpop.f32.mrb[10].mxu1 }
 0x463   : > { %v1565_v22 = vpack.c.bf16 %v685_v25, %v685_v25  ;;  %v1704_v10 = vpop.f32.mrb[11].mxu1 }
 0x465   : > { %729 = vst.msk [vmem:[#allocation2 + $0x14] sm:$0xf] %vm723_vm8, %v1565_v22 }
 0x49b   : > { %v690_v32 = vpop.f32.mrb[12].mxu1 }
 0x49c   : > { %v1566_v43 = vpack.c.bf16 %v690_v32, %v690_v32  ;;  %v1707_v46 = vpop.f32.mrb[13].mxu1 }
 0x49e   : > { %v734_v20 = vsel %vm732_vm11, %v1566_v43, %v733_v39 }
 0x49f   : > { %735 = vst [vmem:[#allocation2 + $0x18] sm:$0x1] %v734_v20  ;;  %v858_v21 = vpop.f32.mrb[14].mxu1 }
 0x4a0   : > { %v1724_v23 = vpop.f32.mrb[15].mxu1  ;;  %v892_v24 = vsel %vm490_vm6, %v858_v21, -inf }
 0x4a1   : > { %893 = vmax.xlane.f32.xlu1 %v892_v24 }
 0x4a3   : > { %v863_v30 = vpop.f32.mrb[16].mxu1 }
 0x4a4   : > { %v1727_v31 = vpop.f32.mrb[17].mxu1  ;;  %v895_v15 = vsel %vm490_vm6, %v863_v30, -inf }
 0x4a5   : > { %896 = vmax.xlane.f32.xlu0 %v895_v15 }
 0x4a7   : > { %v868_v16 = vpop.f32.mrb[18].mxu1 }
 0x4a8   : > { %v1730_v28 = vpop.f32.mrb[19].mxu1  ;;  %v898_v29 = vsel %vm490_vm6, %v868_v16, -inf }
 0x4a9   : > { %899 = vmax.xlane.f32.xlu0 %v898_v29 }
 0x4ab   : > { %v873_v33 = vpop.f32.mrb[20].mxu1 }
 0x4ac   : > { %v1733_v38 = vpop.f32.mrb[21].mxu1  ;;  %v901_v40 = vsel %vm490_vm6, %v873_v33, -inf }
 0x4ad   : > { %902 = vmax.xlane.f32.xlu0 %v901_v40 }
 0x4af   : > { %v878_v42 = vpop.f32.mrb[22].mxu1 }
 0x4b0   : > { %v1736_v45 = vpop.f32.mrb[23].mxu1  ;;  %v904_v36 = vsel %vm490_vm6, %v878_v42, -inf }
 0x4b1   : > { %905 = vmax.xlane.f32.xlu1 %v904_v36 }
 0x4b3   : > { %v883_v48 = vpop.f32.mrb[24].mxu1 }
 0x4b4   : > { %v1739_v53 = vpop.f32.mrb[25].mxu1  ;;  %v907_v55 = vsel %vm490_vm6, %v883_v48, -inf }
 0x4b5   : > { %908 = vmax.xlane.f32.xlu0 %v907_v55 }
 0x4b7   : > { %v888_v27 = vpop.f32.mrb[26].mxu1 }
 0x4b8   : > { %v1742_v57 = vpop.f32.mrb[27].mxu1  ;;  %v910_v37 = vsel %vm509_vm7, %v888_v27, -inf }
 0x4b9   : > { %911 = vmax.xlane.f32.xlu1 %v910_v37 }
 0x4cb   : > { %1866 = vrot.lane.b32.xlu0 %v1865_v6, %s1984_s20 }
 0x52e   : > { %v894_v52 = vpop.xlane.xlu1 %893 }
 0x52f   : > { %v913_v41 = vsub.f32 %v858_v21, %v894_v52 }
 0x531   : > { %v920_v2 = vmul.f32 1.442695, %v913_v41 }
 0x532   : > { %v897_v56 = vpop.xlane.xlu0 %896 }
 0x533   : > { %1930 = vpow2.f32 %v920_v2  ;;  %v914_v3 = vsub.f32 %v863_v30, %v897_v56 }
 0x535   : > { %v922_v58 = vmul.f32 1.442695, %v914_v3 }
 0x536   : > { %v900_v9 = vpop.xlane.xlu0 %899 }
 0x537   : > { %1932 = vpow2.f32 %v922_v58  ;;  %v915_v12 = vsub.f32 %v868_v16, %v900_v9 }
 0x539   : > { %v924_v4 = vmul.f32 1.442695, %v915_v12  ;;  %v1880_v12 = vld [vmem:[%s2544_s2] sm:$0xff]  }
 0x53a   : > { %v903_v17 = vpop.xlane.xlu0 %902  ;;  %1778 = vmatprep.subr.bf16.mxu1 %v1880_v12 }
 0x53b   : > { %1934 = vpow2.f32 %v924_v4  ;;  %v916_v1 = vsub.f32 %v873_v33, %v903_v17  ;;  %1779 = vmatpush3.bf16.msra.mxu1 %v1880_v12  ;;  %v1881_v4 = vld [vmem:[%s2544_s2 + $0x8] sm:$0xff]  }
 0x53c   : > { %1780 = vmatprep.subr.bf16.mxu1 %v1881_v4 }
 0x53d   : > { %v2385_v14 = vpop.eup %1930  ;;  %v926_v25 = vmul.f32 1.442695, %v916_v1 }
 0x53e   : > { %v934_v13 = vsel %vm490_vm6, %v2385_v14, 0.0  ;;  %v906_v0 = vpop.xlane.xlu1 %905 }
 0x53f   : > { %935 = vadd.xlane.f32.xlu0 %v934_v13  ;;  %v917_v18 = vsub.f32 %v878_v42, %v906_v0  ;;  %1936 = vpow2.f32 %v926_v25  ;;  %1781 = vmatpush3.bf16.msra.mxu1 %v1881_v4 }
 0x541   : > { %v2389_v35 = vpop.eup %1932  ;;  %v928_v10 = vmul.f32 1.442695, %v917_v18 }
 0x542   : > { %v909_v26 = vpop.xlane.xlu0 %908  ;;  %v937_v6 = vsel %vm490_vm6, %v2389_v35, 0.0 }
 0x543   : > { %938 = vadd.xlane.f32.xlu1 %v937_v6  ;;  %v918_v32 = vsub.f32 %v883_v48, %v909_v26  ;;  %1938 = vpow2.f32 %v928_v10 }
 0x545   : > { %v2393_v54 = vpop.eup %1934  ;;  %v930_v43 = vmul.f32 1.442695, %v918_v32 }
 0x546   : > { %v1867_v59 = vpop.permute.xlu0 %1866  ;;  %v940_v62 = vsel %vm490_vm6, %v2393_v54, 0.0  ;;  %v912_v5 = vpop.xlane.xlu1 %911 }
 0x547   : > { %v1869_v44 = vunpack.i.h.bf16 %v1867_v59  ;;  %v1868_v34 = vunpack.i.l.bf16 %v1867_v59  ;;  %941 = vadd.xlane.f32.xlu0 %v940_v62  ;;  %v919_v22 = vsub.f32 %v888_v27, %v912_v5 }
 0x549   : > { %v1828_v19 = vpack.c.bf16 %v1869_v44, %v1868_v34  ;;  %v932_v39 = vmul.f32 1.442695, %v919_v22  ;;  %v1937_v47 = vpop.eup %1936 }
 0x54b   : > { %1829 = vmatpush3.bf16.msra.mxu0 %v1828_v19  ;;  %1940 = vpow2.f32 %v932_v39 }
 0x54c   : > { %1830 = vmatprep.subr.bf16.mxu0 %v1981_v49  ;;  %1942 = vpow2.f32 %v930_v43 }
 0x54d   : > { %v1939_v51 = vpop.eup %1938 }
 0x54e   : > { %v946_v61 = vsel %vm490_vm6, %v1939_v51, 0.0 }
 0x554   : > { %1871 = vrot.lane.b32.xlu1 %v1870_v7, %s1984_s20  ;;  %v943_v7 = vsel %vm490_vm6, %v1937_v47, 0.0 }
 0x555   : > { %v2407_v60 = vpop.eup %1940 }
 0x556   : > { %v1943_v46 = vpop.eup %1942 }
 0x557   : > { %v949_v20 = vsel %vm490_vm6, %v1943_v46, 0.0 }
 0x55d   : > { %1876 = vrot.lane.b32.xlu0 %v1875_v8, %s1984_s20  ;;  %v952_v8 = vsel %vm509_vm7, %v2407_v60, 0.0 }
 0x578   : > { %944 = vadd.xlane.f32.xlu1 %v943_v7 }
 0x57c   : > { %947 = vadd.xlane.f32.xlu1 %v946_v61  ;;  %953 = vadd.xlane.f32.xlu0 %v952_v8 }
 0x580   : > { %950 = vadd.xlane.f32.xlu1 %v949_v20 }
 0x592   : > { %987 = vrot.lane.b32.xlu0 %v2197_v11, %s1984_s20 }
 0x5cc   : > { %v936_v21 = vpop.xlane.xlu0 %935 }
 0x5cd   : > { %1944 = vrcp.f32 %v936_v21  ;;  %v1170_v21 = vld [vmem:[#allocation2 + $0x18] sm:$0x1] }
 0x5d0   : > { %v939_v23 = vpop.xlane.xlu1 %938 }
 0x5d1   : > { %1946 = vrcp.f32 %v939_v23 }
 0x5d4   : > { %v942_v24 = vpop.xlane.xlu0 %941  ;;  %v1872_v30 = vpop.permute.xlu1 %1871 }
 0x5d5   : > { %v1874_v31 = vunpack.i.h.bf16 %v1872_v30  ;;  %v1873_v15 = vunpack.i.l.bf16 %v1872_v30  ;;  %1948 = vrcp.f32 %v942_v24 }
 0x5d7   : > { %v1831_v16 = vpack.c.bf16 %v1874_v31, %v1873_v15  ;;  %v1945_v42 = vpop.eup %1944 }
 0x5d8   : > { %v1877_v28 = vpop.permute.xlu0 %1876  ;;  %v956_v36 = vmul.f32 %v1945_v42, %v2385_v14 }
 0x5d9   : > { %v1879_v29 = vunpack.i.h.bf16 %v1877_v28  ;;  %v1878_v33 = vunpack.i.l.bf16 %v1877_v28  ;;  %1832 = vmatpush3.bf16.msra.mxu0 %v1831_v16 }
 0x5da   : > { %1833 = vmatprep.subr.bf16.mxu0 %v1981_v49 }
 0x5db   : > { %v1834_v38 = vpack.c.bf16 %v1879_v29, %v1878_v33  ;;  %v1947_v53 = vpop.eup %1946 }
 0x5dc   : > { %v958_v55 = vmul.f32 %v1947_v53, %v2389_v35 }
 0x5dd   : > { %1835 = vmatpush3.bf16.msra.mxu0 %v1834_v38 }
 0x5de   : > { %1755 = vmatprep.subr.mxu0 %v1983_v50 }
 0x5df   : > { %v1949_v27 = vpop.eup %1948 }
 0x5e0   : > { %v960_v57 = vmul.f32 %v1949_v27, %v2393_v54  ;;  %v1884_v54 = vld [vmem:[%s2544_s2 + $0x18] sm:$0xff]  }
 0x605   : > { %v945_v11 = vpop.xlane.xlu1 %944 }
 0x606   : > { %1950 = vrcp.f32 %v945_v11 }
 0x609   : > { %v954_v40 = vpop.xlane.xlu0 %953  ;;  %v948_v45 = vpop.xlane.xlu1 %947 }
 0x60a   : > { %1952 = vrcp.f32 %v948_v45 }
 0x60d   : > { %v988_v48 = vpop.permute.xlu0 %987  ;;  %v951_v49 = vpop.xlane.xlu1 %950 }
 0x60e   : > { %1756 = vmatpush3.msk.msra.mxu0 %vm590_vm5, %v988_v48  ;;  %1954 = vrcp.f32 %v951_v49 }
 0x60f   : > { %1758 = vmatmul.mubr.msk.f32.vlgmr.msra.gmra.mrb[14].mxu0 %vm490_vm6, %v956_v36  ;;  %1956 = vrcp.f32 %v954_v40 }
 0x610   : > { %1760 = vmatprep.mubr.msk.f32.mxu0 %vm1982_vm2, %v1983_v50  ;;  %v1951_v37 = vpop.eup %1950 }
 0x611   : > { %v962_v52 = vmul.f32 %v1951_v37, %v1937_v47 }
 0x613   : > { %1761 = vmatmul.mubr.msk.f32.gmra.mrb[16].mxu0 %vm490_vm6, %v958_v55 }
 0x614   : > { %1763 = vmatprep.mubr.msk.f32.mxu0 %vm1982_vm2, %v1983_v50  ;;  %v1953_v41 = vpop.eup %1952 }
 0x615   : > { %v964_v2 = vmul.f32 %v1953_v41, %v1939_v51 }
 0x617   : > { %1764 = vmatmul.mubr.msk.f32.gmra.mrb[18].mxu0 %vm490_vm6, %v960_v57 }
 0x618   : > { %1766 = vmatprep.mubr.msk.f32.mxu0 %vm1982_vm2, %v1983_v50  ;;  %v1955_v56 = vpop.eup %1954 }
 0x619   : > { %v966_v3 = vmul.f32 %v1955_v56, %v1943_v46  ;;  %v1957_v58 = vpop.eup %1956 }
 0x61a   : > { %v968_v9 = vmul.f32 %v1957_v58, %v2407_v60 }
 0x61b   : > { %1767 = vmatmul.mubr.msk.f32.gmra.mrb[20].mxu0 %vm490_vm6, %v962_v52 }
 0x61c   : > { %1769 = vmatprep.mubr.msk.f32.mxu0 %vm1982_vm2, %v1983_v50 }
 0x61f   : > { %1770 = vmatmul.mubr.msk.f32.gmra.mrb[22].mxu0 %vm490_vm6, %v964_v2 }
 0x620   : > { %1772 = vmatprep.mubr.msk.f32.mxu0 %vm1982_vm2, %v1983_v50 }
 0x623   : > { %1773 = vmatmul.mubr.msk.f32.gmra.mrb[24].mxu0 %vm490_vm6, %v966_v3 }
 0x624   : > { %1775 = vmatprep.mubr.msk.f32.mxu0 %vm1982_vm2, %v1983_v50  ;;  %v1882_v50 = vld [vmem:[%s2544_s2 + $0x10] sm:$0xff]  }
 0x625   : > { %1782 = vmatprep.subr.bf16.mxu1 %v1882_v50 }
 0x626   : > { %1783 = vmatpush3.bf16.msra.mxu1 %v1882_v50 }
 0x627   : > { %1776 = vmatmul.mubr.msk.f32.gmra.mrb[26].mxu0 %vm490_vm6, %v968_v9  ;;  %1784 = vmatprep.subr.bf16.mxu1 %v1884_v54 }
 0x62a   : > { %1785 = vmatpush3.bf16.msra.mxu1 %v1884_v54 }
 0x6e2   : > { %v1084_v14 = vpop.f32.mrb[14].mxu0 }
 0x6e3   : > { %v1567_v17 = vpack.c.bf16 %v1084_v14, %v1084_v14  ;;  %v1759_v13 = vpop.f32.mrb[15].mxu0 }
 0x6e5   : > { %1140 = vrot.lane.b32.xlu1 %v1567_v17, %s1985_s27 }
 0x6e6   : > { %v1089_v35 = vpop.f32.mrb[16].mxu0 }
 0x6e7   : > { %v1568_v26 = vpack.c.bf16 %v1089_v35, %v1089_v35  ;;  %v1762_v6 = vpop.f32.mrb[17].mxu0 }
 0x6e9   : > { %1142 = vrot.lane.b32.xlu1 %v1568_v26, %s1985_s27 }
 0x6ea   : > { %v1094_v59 = vpop.f32.mrb[18].mxu0 }
 0x6eb   : > { %v1569_v62 = vpack.c.bf16 %v1094_v59, %v1094_v59  ;;  %v1765_v44 = vpop.f32.mrb[19].mxu0 }
 0x6ed   : > { %1144 = vrot.lane.b32.xlu1 %v1569_v62, %s1985_s27 }
 0x6ee   : > { %v1099_v34 = vpop.f32.mrb[20].mxu0 }
 0x6ef   : > { %v1570_v19 = vpack.c.bf16 %v1099_v34, %v1099_v34  ;;  %v1768_v0 = vpop.f32.mrb[21].mxu0 }
 0x6f1   : > { %1146 = vrot.lane.b32.xlu0 %v1570_v19, %s1985_s27 }
 0x6f2   : > { %v1104_v1 = vpop.f32.mrb[22].mxu0 }
 0x6f3   : > { %v1571_v5 = vpack.c.bf16 %v1104_v1, %v1104_v1  ;;  %v1771_v18 = vpop.f32.mrb[23].mxu0 }
 0x6f5   : > { %1148 = vrot.lane.b32.xlu1 %v1571_v5, %s1985_s27 }
 0x6f6   : > { %v1109_v25 = vpop.f32.mrb[24].mxu0 }
 0x6f7   : > { %v1572_v22 = vpack.c.bf16 %v1109_v25, %v1109_v25  ;;  %v1774_v10 = vpop.f32.mrb[25].mxu0 }
 0x6f9   : > { %1150 = vrot.lane.b32.xlu0 %v1572_v22, %s1985_s27 }
 0x6fa   : > { %v1114_v32 = vpop.f32.mrb[26].mxu0 }
 0x6fb   : > { %v1573_v39 = vpack.c.bf16 %v1114_v32, %v1114_v32  ;;  %v1777_v43 = vpop.f32.mrb[27].mxu0 }
 0x6fd   : > { %1152 = vrot.lane.b32.xlu1 %v1573_v39, %s1985_s27 }
 0x757   : > { %v1141_v47 = vpop.permute.xlu1 %1140 }
 0x758   : > { %1162 = vst.msk [vmem:[#allocation2] sm:$0xf] %vm1161_vm12, %v1141_v47 }
 0x75b   : > { %v1143_v51 = vpop.permute.xlu1 %1142 }
 0x75c   : > { %1163 = vst.msk [vmem:[#allocation2 + $0x4] sm:$0xf] %vm1161_vm12, %v1143_v51 }
 0x75f   : > { %v1145_v7 = vpop.permute.xlu1 %1144 }
 0x760   : > { %1164 = vst.msk [vmem:[#allocation2 + $0x8] sm:$0xf] %vm1161_vm12, %v1145_v7 }
 0x763   : > { %v1147_v60 = vpop.permute.xlu0 %1146  ;;  %v1883_v61 = vld [vmem:[#allocation2] sm:$0xff]  }
 0x764   : > { %1165 = vst.msk [vmem:[#allocation2 + $0xc] sm:$0xf] %vm1161_vm12, %v1147_v60  ;;  %1786 = vmatprep.mubr.msk.bf16.mxu1 %vm180_vm0, %v1883_v61 }
 0x767   : > { %v1149_v8 = vpop.permute.xlu1 %1148 }
 0x768   : > { %1166 = vst.msk [vmem:[#allocation2 + $0x10] sm:$0xf] %vm1161_vm12, %v1149_v8 }
 0x76b   : > { %v1151_v46 = vpop.permute.xlu0 %1150  ;;  %v1885_v20 = vld [vmem:[#allocation2 + $0x8] sm:$0xff]  }
 0x76c   : > { %1167 = vst.msk [vmem:[#allocation2 + $0x14] sm:$0xf] %vm1161_vm12, %v1151_v46  ;;  %1787 = vmatmul.mubr.msk.bf16.vlgmr.msra.gmra.mrb[28].mxu1 %vm180_vm0, %v1885_v20 }
 0x76f   : > { %v1153_v23 = vpop.permute.xlu1 %1152 }
 0x770   : > { %v1171_v24 = vsel %vm1169_vm14, %v1153_v23, %v1170_v21  ;;  %v1399_v21 = vsub.s32 6, %v2070_v63 }
 0x771   : > { %1172 = vst [vmem:[#allocation2 + $0x18] sm:$0x1] %v1171_v24  ;;  %v1410_v24 = vsub.s32 7, %v2070_v63 }
 0x773   : > { %v1886_v30 = vld [vmem:[#allocation2 + $0x10] sm:$0xff]  }
 0x774   : > { %1790 = vmatprep.mubr.msk.bf16.mxu1 %vm180_vm0, %v1886_v30 }
 0x778   : > { %v1887_v31 = vld [vmem:[#allocation2 + $0x18] ss:$0 sps:$4 sm:$0x11]  }
 0x779   : > { %1791 = vmatmul.mubr.msk.bf16.gmra.mrb[32].mxu1 %vm180_vm0, %v1887_v31 }
 0x83f   : > { %v1788_v15 = vpop.f32.mrb[28].mxu1 }
 0x840   : > { %v1276_v16 = vpop.f32.mrb[29].mxu1  ;;  %v1312_v28 = vsel %vm180_vm0, %v1788_v15, 0.0 }
 0x841   : > { %v1789_v29 = vpop.f32.mrb[30].mxu1  ;;  %1313 = vadd.xlane.f32.xlu0 %v1312_v28  ;;  %v1306_v11 = vsel %vm180_vm0, %v1276_v16, 0.0 }
 0x842   : > { %v1279_v33 = vpop.f32.mrb[31].mxu1  ;;  %v1315_v40 = vsel %vm180_vm0, %v1789_v29, 0.0 }
 0x843   : > { %v1309_v38 = vsel %vm180_vm0, %v1279_v33, 0.0 }
 0x844   : > { %1310 = vadd.xlane.f32.xlu1 %v1309_v38 }
 0x845   : > { %1307 = vadd.xlane.f32.xlu0 %v1306_v11 }
 0x849   : > { %1316 = vadd.xlane.f32.xlu0 %v1315_v40 }
 0x84c   : > { %v1792_v42 = vpop.f32.mrb[32].mxu1 }
 0x84d   : > { %v1292_v45 = vpop.f32.mrb[33].mxu1  ;;  %v1324_v55 = vsel %vm199_vm1, %v1792_v42, 0.0 }
 0x84e   : > { %v1793_v36 = vpop.f32.mrb[34].mxu1  ;;  %v1318_v48 = vsel %vm180_vm0, %v1292_v45, 0.0 }
 0x84f   : > { %1319 = vadd.xlane.f32.xlu0 %v1318_v48  ;;  %v1295_v53 = vpop.f32.mrb[35].mxu1 }
 0x850   : > { %v1321_v49 = vsel %vm180_vm0, %v1295_v53, 0.0 }
 0x851   : > { %1322 = vadd.xlane.f32.xlu1 %v1321_v49 }
 0x853   : > { %1325 = vadd.xlane.f32.xlu0 %v1324_v55 }
 0x8ce   : > { %v1314_v27 = vpop.xlane.xlu0 %1313 }
 0x8cf   : > { %v1329_v57 = vmul.f32 0.015625, %v1314_v27 }
 0x8d1   : > { %v2471_v37 = vsub.f32 %v1788_v15, %v1329_v57  ;;  %v1311_v52 = vpop.xlane.xlu1 %1310  ;;  %v1972_v15 = vld [vmem:[%s2543_s1] sm:$0xff] }
 0x8d2   : > { %v1308_v41 = vpop.xlane.xlu0 %1307  ;;  %v1328_v3 = vmul.f32 0.015625, %v1311_v52  ;;  %v1411_v11 = vrot.slane %v1972_v15, %v1410_v24 }
 0x8d3   : > { %v1327_v2 = vmul.f32 0.015625, %v1308_v41  ;;  %v1343_v56 = vmul.f32 %v2471_v37, %v2471_v37 }
 0x8d4   : > { %v2480_v17 = vsub.f32 %v1279_v33, %v1328_v3 }
 0x8d5   : > { %v2475_v58 = vsub.f32 %v1276_v16, %v1327_v2  ;;  %v1354_v9 = vsel %vm180_vm0, %v1343_v56, 0.0  ;;  %v1400_v16 = vrot.slane %v1972_v15, %v1399_v21 }
 0x8d6   : > { %v1317_v12 = vpop.xlane.xlu0 %1316  ;;  %1355 = vadd.xlane.f32.xlu1 %v1354_v9  ;;  %v1342_v59 = vmul.f32 %v2480_v17, %v2480_v17 }
 0x8d7   : > { %v1330_v4 = vmul.f32 0.015625, %v1317_v12  ;;  %v1341_v14 = vmul.f32 %v2475_v58, %v2475_v58 }
 0x8d8   : > { %v1351_v5 = vsel %vm180_vm0, %v1342_v59, 0.0 }
 0x8d9   : > { %v2482_v13 = vsub.f32 %v1789_v29, %v1330_v4  ;;  %v1348_v50 = vsel %vm180_vm0, %v1341_v14, 0.0 }
 0x8da   : > { %1349 = vadd.xlane.f32.xlu1 %v1348_v50 }
 0x8db   : > { %v1344_v35 = vmul.f32 %v2482_v13, %v2482_v13 }
 0x8dc   : > { %v1320_v26 = vpop.xlane.xlu0 %1319 }
 0x8dd   : > { %v1331_v6 = vmul.f32 0.015625, %v1320_v26  ;;  %v1357_v54 = vsel %vm180_vm0, %v1344_v35, 0.0 }
 0x8de   : > { %1358 = vadd.xlane.f32.xlu0 %v1357_v54  ;;  %v1323_v62 = vpop.xlane.xlu1 %1322 }
 0x8df   : > { %v2490_v44 = vsub.f32 %v1292_v45, %v1331_v6  ;;  %v1332_v34 = vmul.f32 0.015625, %v1323_v62 }
 0x8e0   : > { %v1326_v19 = vpop.xlane.xlu0 %1325 }
 0x8e1   : > { %v2492_v0 = vsub.f32 %v1295_v53, %v1332_v34  ;;  %v1333_v1 = vmul.f32 0.015625, %v1326_v19  ;;  %v1345_v18 = vmul.f32 %v2490_v44, %v2490_v44 }
 0x8e2   : > { %1352 = vadd.xlane.f32.xlu0 %v1351_v5 }
 0x8e3   : > { %v2497_v25 = vsub.f32 %v1792_v42, %v1333_v1  ;;  %v1360_v22 = vsel %vm180_vm0, %v1345_v18, 0.0  ;;  %v1346_v10 = vmul.f32 %v2492_v0, %v2492_v0 }
 0x8e4   : > { %1361 = vadd.xlane.f32.xlu1 %v1360_v22 }
 0x8e5   : > { %v1363_v32 = vsel %vm180_vm0, %v1346_v10, 0.0  ;;  %v1347_v39 = vmul.f32 %v2497_v25, %v2497_v25 }
 0x8e6   : > { %1364 = vadd.xlane.f32.xlu0 %v1363_v32 }
 0x8e7   : > { %v1366_v43 = vsel %vm199_vm1, %v1347_v39, 0.0 }
 0x8e8   : > { %1367 = vadd.xlane.f32.xlu1 %v1366_v43 }
 0x963   : > { %v1356_v47 = vpop.xlane.xlu1 %1355 }
 0x964   : > { %v1371_v51 = vmul.f32 0.015625, %v1356_v47 }
 0x966   : > { %v1378_v7 = vadd.f32 1e-06, %v1371_v51 }
 0x967   : > { %v1350_v60 = vpop.xlane.xlu1 %1349 }
 0x968   : > { %1958 = vrsqrt.f32 %v1378_v7  ;;  %v1369_v61 = vmul.f32 0.015625, %v1350_v60 }
 0x96a   : > { %v1376_v8 = vadd.f32 1e-06, %v1369_v61 }
 0x96b   : > { %v1359_v46 = vpop.xlane.xlu0 %1358 }
 0x96c   : > { %1960 = vrsqrt.f32 %v1376_v8  ;;  %v1372_v20 = vmul.f32 0.015625, %v1359_v46 }
 0x96e   : > { %v1379_v23 = vadd.f32 1e-06, %v1372_v20 }
 0x96f   : > { %v1353_v30 = vpop.xlane.xlu0 %1352 }
 0x970   : > { %1962 = vrsqrt.f32 %v1379_v23  ;;  %v1370_v31 = vmul.f32 0.015625, %v1353_v30 }
 0x971   : > { %v1362_v28 = vpop.xlane.xlu1 %1361 }
 0x972   : > { %v1959_v29 = vpop.eup %1958  ;;  %v1377_v33 = vadd.f32 1e-06, %v1370_v31  ;;  %v1373_v38 = vmul.f32 0.015625, %v1362_v28 }
 0x973   : > { %v1392_v40 = vmul.f32 %v1959_v29, %v2471_v37  ;;  %v1365_v42 = vpop.xlane.xlu0 %1364 }
 0x974   : > { %1964 = vrsqrt.f32 %v1377_v33  ;;  %v1380_v45 = vadd.f32 1e-06, %v1373_v38  ;;  %v1374_v63 = vmul.f32 0.015625, %v1365_v42 }
 0x975   : > { %v1403_v36 = vmul.f32 %v1400_v16, %v1392_v40  ;;  %v1368_v48 = vpop.xlane.xlu1 %1367 }
 0x976   : > { %v1961_v53 = vpop.eup %1960  ;;  %1966 = vrsqrt.f32 %v1380_v45  ;;  %v1381_v49 = vadd.f32 1e-06, %v1374_v63  ;;  %v1375_v55 = vmul.f32 0.015625, %v1368_v48 }
 0x977   : > { %v1414_v27 = vadd.f32 %v1411_v11, %v1403_v36  ;;  %v1390_v57 = vmul.f32 %v1961_v53, %v2475_v58 }
 0x978   : > { %1968 = vrsqrt.f32 %v1381_v49  ;;  %v1382_v37 = vadd.f32 1e-06, %v1375_v55 }
 0x979   : > { %1421 = vst.msk [vmem:[%s2517_s7 + $0x10] sm:$0xff] %vm180_vm0, %v1414_v27  ;;  %v1401_v52 = vmul.f32 %v1400_v16, %v1390_v57 }
 0x97a   : > { %v1963_v41 = vpop.eup %1962  ;;  %1970 = vrsqrt.f32 %v1382_v37 }
 0x97b   : > { %v1412_v2 = vadd.f32 %v1411_v11, %v1401_v52  ;;  %v1393_v56 = vmul.f32 %v1963_v41, %v2482_v13 }
 0x97d   : > { %1419 = vst.msk [vmem:[%s2517_s7] sm:$0xff] %vm180_vm0, %v1412_v2  ;;  %v1404_v3 = vmul.f32 %v1400_v16, %v1393_v56 }
 0x97e   : > { %v1965_v9 = vpop.eup %1964 }
 0x97f   : > { %v1415_v12 = vadd.f32 %v1411_v11, %v1404_v3  ;;  %v1391_v4 = vmul.f32 %v1965_v9, %v2480_v17 }
 0x980   : > { %v1967_v58 = vpop.eup %1966 }
 0x981   : > { %1422 = vst.msk [vmem:[%s2517_s7 + $0x18] sm:$0xff] %vm180_vm0, %v1415_v12  ;;  %v1402_v14 = vmul.f32 %v1400_v16, %v1391_v4  ;;  %v1394_v50 = vmul.f32 %v1967_v58, %v2490_v44 }
 0x982   : > { %v1969_v35 = vpop.eup %1968 }
 0x983   : > { %v1413_v26 = vadd.f32 %v1411_v11, %v1402_v14  ;;  %v1405_v6 = vmul.f32 %v1400_v16, %v1394_v50  ;;  %v1395_v13 = vmul.f32 %v1969_v35, %v2492_v0 }
 0x984   : > { %v1971_v54 = vpop.eup %1970 }
 0x985   : > { %1420 = vst.msk [vmem:[%s2517_s7 + $0x8] sm:$0xff] %vm180_vm0, %v1413_v26  ;;  %v1416_v59 = vadd.f32 %v1411_v11, %v1405_v6  ;;  %v1406_v62 = vmul.f32 %v1400_v16, %v1395_v13  ;;  %v1396_v17 = vmul.f32 %v1971_v54, %v2497_v25 }
 0x987   : > { %1423 = vst.msk [vmem:[%s2517_s7 + $0x20] sm:$0xff] %vm180_vm0, %v1416_v59  ;;  %v1417_v34 = vadd.f32 %v1411_v11, %v1406_v62  ;;  %v1407_v19 = vmul.f32 %v1400_v16, %v1396_v17 }
 0x989   : > { %1424 = vst.msk [vmem:[%s2517_s7 + $0x28] sm:$0xff] %vm180_vm0, %v1417_v34  ;;  %v1418_v1 = vadd.f32 %v1411_v11, %v1407_v19 }
 0x98b   : > { %1425 = vst.msk [vmem:[%s2517_s7 + $0x30] sm:$0x1] %vm199_vm1, %v1418_v1 }
 0x98c PF: > { %s13_s12 = sadd.s32 1, %s1979_s12  }
 0x98d   : > { %p10_p4 = scmp.ge.s32.totalorder %s13_s12, 4  }
 0x98f   :  { %12 = sbr.rel (!%p10_p4) target bundleno = 1 (0x1), region = 62 }

</bundles_post_ra>
